<compile_context>
chip_gen: v5e
topology: v5e:2x2
jax: 0.10.0
libtpu: 0.0.40
codegen_flags: <defaults>
</compile_context>

<pallas_src>
import functools

import jax
import jax.numpy as jnp
from jax import lax
from jax.experimental import pallas as pl
from jax.experimental.pallas import tpu as pltpu


def cross_attention_kernel(x_ref, y_ref, wq_ref, wk_ref, wv_ref, wp_ref, bp_ref,
                           o_ref, q_sc, k_sc, v_sc, acc_sc, *, num_heads):
    N, C = x_ref.shape                      # leading batch dim squeezed by BlockSpec
    hd = C // num_heads

    # ---- fused input projections: bf16 operands, f32 accumulation on the MXU ----
    x2 = x_ref[...]                         # (N, C) bf16
    y2 = y_ref[...]                         # (N, C) bf16
    q = jnp.dot(x2, wq_ref[...], preferred_element_type=jnp.float32)   # scale folded in Wq
    k = jnp.dot(y2, wk_ref[...], preferred_element_type=jnp.float32)
    v = jnp.dot(y2, wv_ref[...], preferred_element_type=jnp.float32)
    qb = q.astype(jnp.bfloat16)
    kb = k.astype(jnp.bfloat16)
    vb = v.astype(jnp.bfloat16)

    # ---- stage head-major into VMEM scratch (trace-time loop, 3 small stores/head)
    # so the runtime head loop only indexes the leading (untiled) scratch dim. ----
    for h in range(num_heads):
        c0, c1 = h * hd, (h + 1) * hd
        q_sc[h] = qb[:, c0:c1]
        k_sc[h] = kb[:, c0:c1]
        v_sc[h] = vb[:, c0:c1]

    acc_sc[...] = jnp.zeros_like(acc_sc)

    # ---- per-head attention core + folded output projection (lane-dense stores) ----
    def head_body(h, carry):
        qh = q_sc[h]                        # (N, hd) bf16, dynamic leading-dim index
        kh = k_sc[h]
        vh = v_sc[h]
        # scores: contract hd with hd (no transpose), f32 accumulation
        s = lax.dot_general(qh, kh, (((1,), (1,)), ((), ())),
                            preferred_element_type=jnp.float32)        # (N, N) f32
        s = s - jnp.max(s, axis=-1, keepdims=True)                     # stable softmax
        p = jnp.exp(s)                                                  # f32
        denom = jnp.sum(p, axis=-1, keepdims=True)                      # (N, 1) f32
        o_h = jnp.dot(p.astype(jnp.bfloat16), vh,
                      preferred_element_type=jnp.float32)               # (N, hd) f32
        o_h = o_h * pl.reciprocal(denom, approx=True)                   # normalize after PV
        # attn_drop has p=0.0 (module default) -> identity at inference.
        c0 = pl.multiple_of(h * hd, hd)
        wp_h = wp_ref[pl.ds(c0, hd), :]                                  # (hd, C) bf16 sublane slice
        acc_sc[...] += jnp.dot(o_h.astype(jnp.bfloat16), wp_h,
                               preferred_element_type=jnp.float32)       # lane-dense (N, C)
        return carry

    lax.fori_loop(0, num_heads, head_body, 0)

    # ---- bias (f32) + cast; proj_drop p=0.0 -> identity ----
    o_ref[...] = (acc_sc[...] + bp_ref[...]).astype(o_ref.dtype)


def cross_attention(x, y, wq, wkv, wp, bp, *, num_heads):
    """x, y: (B, N, C).  Weights use nn.Linear convention: (out_features, in_features)."""
    B, N, C = x.shape
    assert y.shape == (B, N, C)
    assert C % num_heads == 0
    hd = C // num_heads
    scale = hd ** -0.5

    # Host-side layout plumbing (constant-folded under jit):
    #   transpose to (in, out), split fused KV weight, fold 1/sqrt(hd) into Wq,
    #   cast matmul operands to bf16, keep the bias in f32.
    wq_t = (jnp.transpose(wq) * scale).astype(jnp.bfloat16)   # (C, C)
    wk_t = jnp.transpose(wkv[:C, :]).astype(jnp.bfloat16)     # (C, C)
    wv_t = jnp.transpose(wkv[C:, :]).astype(jnp.bfloat16)     # (C, C)
    wp_t = jnp.transpose(wp).astype(jnp.bfloat16)             # (C, C)
    bp2 = bp.reshape(1, C).astype(jnp.float32)
    xb = x.astype(jnp.bfloat16)
    yb = y.astype(jnp.bfloat16)

    kernel = functools.partial(cross_attention_kernel, num_heads=num_heads)

    flops = (2 * B * N * C * (4 * C)                        # q/k/v + out projections
             + 2 * B * num_heads * N * N * (2 * hd))        # scores + PV
    bytes_accessed = (2 * B * N * C * 2                     # x, y (bf16)
                      + 4 * C * C * 2 + C * 4               # weights (bf16) + bias (f32)
                      + B * N * C * x.dtype.itemsize)       # output
    cost = pl.CostEstimate(flops=flops,
                           transcendentals=B * num_heads * N * N,
                           bytes_accessed=bytes_accessed)

    resident = dict(pipeline_mode=pl.Buffered(1))           # grid-invariant -> single buffer

    return pl.pallas_call(
        kernel,
        out_shape=jax.ShapeDtypeStruct((B, N, C), x.dtype),
        grid=(B,),
        in_specs=[
            pl.BlockSpec((None, N, C), lambda b: (b, 0, 0)),       # x block (squeezed)
            pl.BlockSpec((None, N, C), lambda b: (b, 0, 0)),       # y block (squeezed)
            pl.BlockSpec((C, C), lambda b: (0, 0), **resident),    # Wq^T * scale
            pl.BlockSpec((C, C), lambda b: (0, 0), **resident),    # Wk^T
            pl.BlockSpec((C, C), lambda b: (0, 0), **resident),    # Wv^T
            pl.BlockSpec((C, C), lambda b: (0, 0), **resident),    # Wproj^T
            pl.BlockSpec((1, C), lambda b: (0, 0), **resident),    # bproj (f32)
        ],
        out_specs=pl.BlockSpec((None, N, C), lambda b: (b, 0, 0)),
        scratch_shapes=[
            pltpu.VMEM((num_heads, N, hd), jnp.bfloat16),   # q, head-major
            pltpu.VMEM((num_heads, N, hd), jnp.bfloat16),   # k, head-major
            pltpu.VMEM((num_heads, N, hd), jnp.bfloat16),   # v, head-major
            pltpu.VMEM((N, C), jnp.float32),                # folded-proj accumulator
        ],
        compiler_params=pltpu.CompilerParams(
            dimension_semantics=("parallel",),
            vmem_limit_bytes=48 * 1024 * 1024,
        ),
        cost_estimate=cost,
    )(xb, yb, wq_t, wk_t, wv_t, wp_t, bp2)


def reference_cross_attention(x, y, wq, wkv, wp, bp, *, num_heads):
    """Plain-JAX mirror of the PyTorch forward for a correctness check."""
    B, N, C = x.shape
    hd = C // num_heads
    scale = hd ** -0.5
    q = (x @ wq.T).reshape(B, N, num_heads, hd).transpose(0, 2, 1, 3) * scale
    kv = (y @ wkv.T).reshape(B, N, 2, num_heads, hd).transpose(2, 0, 3, 1, 4)
    k, v = kv[0], kv[1]
    attn = jnp.einsum('bhnd,bhmd->bhnm', q, k)
    attn = jax.nn.softmax(attn, axis=-1)
    out = jnp.einsum('bhnm,bhmd->bhnd', attn, v).transpose(0, 2, 1, 3).reshape(B, N, C)
    return out @ wp.T + bp


if __name__ == "__main__":
    B, N, C = 4, 16, 256
    num_heads = 8          # module default; head_dim = 32

    key = jax.random.PRNGKey(0)
    kx, ky, kq, kkv, kp, kb = jax.random.split(key, 6)

    x = jax.random.normal(kx, (B, N, C), dtype=jnp.float32)
    y = jax.random.normal(ky, (B, N, C), dtype=jnp.float32)

    # Deterministic synthetic parameters in nn.Linear layout (out_features, in_features).
    wq = jax.random.normal(kq, (C, C), dtype=jnp.float32) * 0.05        # query weight (no bias)
    wkv = jax.random.normal(kkv, (2 * C, C), dtype=jnp.float32) * 0.05  # key_value weight (no bias)
    wp = jax.random.normal(kp, (C, C), dtype=jnp.float32) * 0.05        # proj weight
    bp = jax.random.normal(kb, (C,), dtype=jnp.float32) * 0.05          # proj bias

    out = cross_attention(x, y, wq, wkv, wp, bp, num_heads=num_heads)
    out = jax.block_until_ready(out)

    ref = reference_cross_attention(x, y, wq, wkv, wp, bp, num_heads=num_heads)
    assert out.shape == (B, N, C)
    max_err = jnp.max(jnp.abs(out - ref))
    assert jnp.allclose(out, ref, atol=3e-2, rtol=3e-2), f"mismatch vs reference (max abs err {max_err})"

    print("KERNEL_OK")
</pallas_src>

<mosaic_0001>
module attributes {stable_mosaic.version = 11 : i64} {
  func.func @cross_attention_kernel(%arg0: i32, %arg1: memref<1x16x256xbf16, #tpu.memory_space<vmem>>, %arg2: memref<1x16x256xbf16, #tpu.memory_space<vmem>>, %arg3: memref<256x256xbf16, #tpu.memory_space<vmem>>, %arg4: memref<256x256xbf16, #tpu.memory_space<vmem>>, %arg5: memref<256x256xbf16, #tpu.memory_space<vmem>>, %arg6: memref<256x256xbf16, #tpu.memory_space<vmem>>, %arg7: memref<1x256xf32, #tpu.memory_space<vmem>>, %arg8: memref<1x16x256xf32, #tpu.memory_space<vmem>>, %arg9: memref<8x16x32xbf16, #tpu.memory_space<vmem>>, %arg10: memref<8x16x32xbf16, #tpu.memory_space<vmem>>, %arg11: memref<8x16x32xbf16, #tpu.memory_space<vmem>>, %arg12: memref<16x256xf32, #tpu.memory_space<vmem>>) attributes {dimension_semantics = [#tpu.dimension_semantics<parallel>], iteration_bounds = array<i64: 4>, scalar_prefetch = 0 : i64, scratch_operands = 4 : i64, tpu.core_type = #tpu.core_type<tc>, window_params = [{transform_indices = @transform_0, window_bounds = array<i64: 1, 16, 256>}, {transform_indices = @transform_1, window_bounds = array<i64: 1, 16, 256>}, {pipeline_mode = #tpu.pipeline_mode<synchronous>, transform_indices = @transform_2, window_bounds = array<i64: 256, 256>}, {pipeline_mode = #tpu.pipeline_mode<synchronous>, transform_indices = @transform_3, window_bounds = array<i64: 256, 256>}, {pipeline_mode = #tpu.pipeline_mode<synchronous>, transform_indices = @transform_4, window_bounds = array<i64: 256, 256>}, {pipeline_mode = #tpu.pipeline_mode<synchronous>, transform_indices = @transform_5, window_bounds = array<i64: 256, 256>}, {pipeline_mode = #tpu.pipeline_mode<synchronous>, transform_indices = @transform_6, window_bounds = array<i64: 1, 256>}, {transform_indices = @transform_7, window_bounds = array<i64: 1, 16, 256>}]} {
    %c0 = arith.constant 0 : index
    %c0_0 = arith.constant 0 : index
    %c0_1 = arith.constant 0 : index
    %0 = vector.load %arg1[%c0, %c0_0, %c0_1] : memref<1x16x256xbf16, #tpu.memory_space<vmem>>, vector<1x16x256xbf16>
    %1 = vector.shape_cast %0 : vector<1x16x256xbf16> to vector<16x256xbf16>
    %c0_2 = arith.constant 0 : index
    %c0_3 = arith.constant 0 : index
    %c0_4 = arith.constant 0 : index
    %2 = vector.load %arg2[%c0_2, %c0_3, %c0_4] : memref<1x16x256xbf16, #tpu.memory_space<vmem>>, vector<1x16x256xbf16>
    %3 = vector.shape_cast %2 : vector<1x16x256xbf16> to vector<16x256xbf16>
    %c0_5 = arith.constant 0 : index
    %c0_6 = arith.constant 0 : index
    %4 = vector.load %arg3[%c0_5, %c0_6] : memref<256x256xbf16, #tpu.memory_space<vmem>>, vector<256x256xbf16>
    %cst = arith.constant dense<0.000000e+00> : vector<16x256xf32>
    %5 = tpu.matmul %1, %4, %cst {dimension_numbers = #tpu.dot_dimension_numbers<[1], [0], [0], [1], [0, 0, 1, 1], [], []>} : vector<16x256xbf16>, vector<256x256xbf16>, vector<16x256xf32> -> vector<16x256xf32>
    %c0_7 = arith.constant 0 : index
    %c0_8 = arith.constant 0 : index
    %6 = vector.load %arg4[%c0_7, %c0_8] : memref<256x256xbf16, #tpu.memory_space<vmem>>, vector<256x256xbf16>
    %cst_9 = arith.constant dense<0.000000e+00> : vector<16x256xf32>
    %7 = tpu.matmul %3, %6, %cst_9 {dimension_numbers = #tpu.dot_dimension_numbers<[1], [0], [0], [1], [0, 0, 1, 1], [], []>} : vector<16x256xbf16>, vector<256x256xbf16>, vector<16x256xf32> -> vector<16x256xf32>
    %c0_10 = arith.constant 0 : index
    %c0_11 = arith.constant 0 : index
    %8 = vector.load %arg5[%c0_10, %c0_11] : memref<256x256xbf16, #tpu.memory_space<vmem>>, vector<256x256xbf16>
    %cst_12 = arith.constant dense<0.000000e+00> : vector<16x256xf32>
    %9 = tpu.matmul %3, %8, %cst_12 {dimension_numbers = #tpu.dot_dimension_numbers<[1], [0], [0], [1], [0, 0, 1, 1], [], []>} : vector<16x256xbf16>, vector<256x256xbf16>, vector<16x256xf32> -> vector<16x256xf32>
    %10 = arith.truncf %5 : vector<16x256xf32> to vector<16x256xbf16>
    %11 = arith.truncf %7 : vector<16x256xf32> to vector<16x256xbf16>
    %12 = arith.truncf %9 : vector<16x256xf32> to vector<16x256xbf16>
    %13 = vector.extract_strided_slice %10 {offsets = [0, 0], sizes = [16, 32], strides = [1, 1]} : vector<16x256xbf16> to vector<16x32xbf16>
    %c0_13 = arith.constant 0 : index
    %c0_14 = arith.constant 0 : index
    %c0_15 = arith.constant 0 : index
    %14 = vector.load %arg9[%c0_13, %c0_14, %c0_15] : memref<8x16x32xbf16, #tpu.memory_space<vmem>>, vector<1x16x32xbf16>
    %15 = vector.shape_cast %14 : vector<1x16x32xbf16> to vector<16x32xbf16>
    %16 = vector.shape_cast %13 : vector<16x32xbf16> to vector<1x16x32xbf16>
    tpu.vector_store %arg9[%c0_13, %c0_14, %c0_15], %16 {strides = array<i32>} : memref<8x16x32xbf16, #tpu.memory_space<vmem>>, vector<1x16x32xbf16>,
    %17 = vector.extract_strided_slice %11 {offsets = [0, 0], sizes = [16, 32], strides = [1, 1]} : vector<16x256xbf16> to vector<16x32xbf16>
    %c0_16 = arith.constant 0 : index
    %c0_17 = arith.constant 0 : index
    %c0_18 = arith.constant 0 : index
    %18 = vector.load %arg10[%c0_16, %c0_17, %c0_18] : memref<8x16x32xbf16, #tpu.memory_space<vmem>>, vector<1x16x32xbf16>
    %19 = vector.shape_cast %18 : vector<1x16x32xbf16> to vector<16x32xbf16>
    %20 = vector.shape_cast %17 : vector<16x32xbf16> to vector<1x16x32xbf16>
    tpu.vector_store %arg10[%c0_16, %c0_17, %c0_18], %20 {strides = array<i32>} : memref<8x16x32xbf16, #tpu.memory_space<vmem>>, vector<1x16x32xbf16>,
    %21 = vector.extract_strided_slice %12 {offsets = [0, 0], sizes = [16, 32], strides = [1, 1]} : vector<16x256xbf16> to vector<16x32xbf16>
    %c0_19 = arith.constant 0 : index
    %c0_20 = arith.constant 0 : index
    %c0_21 = arith.constant 0 : index
    %22 = vector.load %arg11[%c0_19, %c0_20, %c0_21] : memref<8x16x32xbf16, #tpu.memory_space<vmem>>, vector<1x16x32xbf16>
    %23 = vector.shape_cast %22 : vector<1x16x32xbf16> to vector<16x32xbf16>
    %24 = vector.shape_cast %21 : vector<16x32xbf16> to vector<1x16x32xbf16>
    tpu.vector_store %arg11[%c0_19, %c0_20, %c0_21], %24 {strides = array<i32>} : memref<8x16x32xbf16, #tpu.memory_space<vmem>>, vector<1x16x32xbf16>,
    %25 = vector.extract_strided_slice %10 {offsets = [0, 32], sizes = [16, 32], strides = [1, 1]} : vector<16x256xbf16> to vector<16x32xbf16>
    %c1 = arith.constant 1 : index
    %c0_22 = arith.constant 0 : index
    %c0_23 = arith.constant 0 : index
    %26 = vector.load %arg9[%c1, %c0_22, %c0_23] : memref<8x16x32xbf16, #tpu.memory_space<vmem>>, vector<1x16x32xbf16>
    %27 = vector.shape_cast %26 : vector<1x16x32xbf16> to vector<16x32xbf16>
    %28 = vector.shape_cast %25 : vector<16x32xbf16> to vector<1x16x32xbf16>
    tpu.vector_store %arg9[%c1, %c0_22, %c0_23], %28 {strides = array<i32>} : memref<8x16x32xbf16, #tpu.memory_space<vmem>>, vector<1x16x32xbf16>,
    %29 = vector.extract_strided_slice %11 {offsets = [0, 32], sizes = [16, 32], strides = [1, 1]} : vector<16x256xbf16> to vector<16x32xbf16>
    %c1_24 = arith.constant 1 : index
    %c0_25 = arith.constant 0 : index
    %c0_26 = arith.constant 0 : index
    %30 = vector.load %arg10[%c1_24, %c0_25, %c0_26] : memref<8x16x32xbf16, #tpu.memory_space<vmem>>, vector<1x16x32xbf16>
    %31 = vector.shape_cast %30 : vector<1x16x32xbf16> to vector<16x32xbf16>
    %32 = vector.shape_cast %29 : vector<16x32xbf16> to vector<1x16x32xbf16>
    tpu.vector_store %arg10[%c1_24, %c0_25, %c0_26], %32 {strides = array<i32>} : memref<8x16x32xbf16, #tpu.memory_space<vmem>>, vector<1x16x32xbf16>,
    %33 = vector.extract_strided_slice %12 {offsets = [0, 32], sizes = [16, 32], strides = [1, 1]} : vector<16x256xbf16> to vector<16x32xbf16>
    %c1_27 = arith.constant 1 : index
    %c0_28 = arith.constant 0 : index
    %c0_29 = arith.constant 0 : index
    %34 = vector.load %arg11[%c1_27, %c0_28, %c0_29] : memref<8x16x32xbf16, #tpu.memory_space<vmem>>, vector<1x16x32xbf16>
    %35 = vector.shape_cast %34 : vector<1x16x32xbf16> to vector<16x32xbf16>
    %36 = vector.shape_cast %33 : vector<16x32xbf16> to vector<1x16x32xbf16>
    tpu.vector_store %arg11[%c1_27, %c0_28, %c0_29], %36 {strides = array<i32>} : memref<8x16x32xbf16, #tpu.memory_space<vmem>>, vector<1x16x32xbf16>,
    %37 = vector.extract_strided_slice %10 {offsets = [0, 64], sizes = [16, 32], strides = [1, 1]} : vector<16x256xbf16> to vector<16x32xbf16>
    %c2 = arith.constant 2 : index
    %c0_30 = arith.constant 0 : index
    %c0_31 = arith.constant 0 : index
    %38 = vector.load %arg9[%c2, %c0_30, %c0_31] : memref<8x16x32xbf16, #tpu.memory_space<vmem>>, vector<1x16x32xbf16>
    %39 = vector.shape_cast %38 : vector<1x16x32xbf16> to vector<16x32xbf16>
    %40 = vector.shape_cast %37 : vector<16x32xbf16> to vector<1x16x32xbf16>
    tpu.vector_store %arg9[%c2, %c0_30, %c0_31], %40 {strides = array<i32>} : memref<8x16x32xbf16, #tpu.memory_space<vmem>>, vector<1x16x32xbf16>,
    %41 = vector.extract_strided_slice %11 {offsets = [0, 64], sizes = [16, 32], strides = [1, 1]} : vector<16x256xbf16> to vector<16x32xbf16>
    %c2_32 = arith.constant 2 : index
    %c0_33 = arith.constant 0 : index
    %c0_34 = arith.constant 0 : index
    %42 = vector.load %arg10[%c2_32, %c0_33, %c0_34] : memref<8x16x32xbf16, #tpu.memory_space<vmem>>, vector<1x16x32xbf16>
    %43 = vector.shape_cast %42 : vector<1x16x32xbf16> to vector<16x32xbf16>
    %44 = vector.shape_cast %41 : vector<16x32xbf16> to vector<1x16x32xbf16>
    tpu.vector_store %arg10[%c2_32, %c0_33, %c0_34], %44 {strides = array<i32>} : memref<8x16x32xbf16, #tpu.memory_space<vmem>>, vector<1x16x32xbf16>,
    %45 = vector.extract_strided_slice %12 {offsets = [0, 64], sizes = [16, 32], strides = [1, 1]} : vector<16x256xbf16> to vector<16x32xbf16>
    %c2_35 = arith.constant 2 : index
    %c0_36 = arith.constant 0 : index
    %c0_37 = arith.constant 0 : index
    %46 = vector.load %arg11[%c2_35, %c0_36, %c0_37] : memref<8x16x32xbf16, #tpu.memory_space<vmem>>, vector<1x16x32xbf16>
    %47 = vector.shape_cast %46 : vector<1x16x32xbf16> to vector<16x32xbf16>
    %48 = vector.shape_cast %45 : vector<16x32xbf16> to vector<1x16x32xbf16>
    tpu.vector_store %arg11[%c2_35, %c0_36, %c0_37], %48 {strides = array<i32>} : memref<8x16x32xbf16, #tpu.memory_space<vmem>>, vector<1x16x32xbf16>,
    %49 = vector.extract_strided_slice %10 {offsets = [0, 96], sizes = [16, 32], strides = [1, 1]} : vector<16x256xbf16> to vector<16x32xbf16>
    %c3 = arith.constant 3 : index
    %c0_38 = arith.constant 0 : index
    %c0_39 = arith.constant 0 : index
    %50 = vector.load %arg9[%c3, %c0_38, %c0_39] : memref<8x16x32xbf16, #tpu.memory_space<vmem>>, vector<1x16x32xbf16>
    %51 = vector.shape_cast %50 : vector<1x16x32xbf16> to vector<16x32xbf16>
    %52 = vector.shape_cast %49 : vector<16x32xbf16> to vector<1x16x32xbf16>
    tpu.vector_store %arg9[%c3, %c0_38, %c0_39], %52 {strides = array<i32>} : memref<8x16x32xbf16, #tpu.memory_space<vmem>>, vector<1x16x32xbf16>,
    %53 = vector.extract_strided_slice %11 {offsets = [0, 96], sizes = [16, 32], strides = [1, 1]} : vector<16x256xbf16> to vector<16x32xbf16>
    %c3_40 = arith.constant 3 : index
    %c0_41 = arith.constant 0 : index
    %c0_42 = arith.constant 0 : index
    %54 = vector.load %arg10[%c3_40, %c0_41, %c0_42] : memref<8x16x32xbf16, #tpu.memory_space<vmem>>, vector<1x16x32xbf16>
    %55 = vector.shape_cast %54 : vector<1x16x32xbf16> to vector<16x32xbf16>
    %56 = vector.shape_cast %53 : vector<16x32xbf16> to vector<1x16x32xbf16>
    tpu.vector_store %arg10[%c3_40, %c0_41, %c0_42], %56 {strides = array<i32>} : memref<8x16x32xbf16, #tpu.memory_space<vmem>>, vector<1x16x32xbf16>,
    %57 = vector.extract_strided_slice %12 {offsets = [0, 96], sizes = [16, 32], strides = [1, 1]} : vector<16x256xbf16> to vector<16x32xbf16>
    %c3_43 = arith.constant 3 : index
    %c0_44 = arith.constant 0 : index
    %c0_45 = arith.constant 0 : index
    %58 = vector.load %arg11[%c3_43, %c0_44, %c0_45] : memref<8x16x32xbf16, #tpu.memory_space<vmem>>, vector<1x16x32xbf16>
    %59 = vector.shape_cast %58 : vector<1x16x32xbf16> to vector<16x32xbf16>
    %60 = vector.shape_cast %57 : vector<16x32xbf16> to vector<1x16x32xbf16>
    tpu.vector_store %arg11[%c3_43, %c0_44, %c0_45], %60 {strides = array<i32>} : memref<8x16x32xbf16, #tpu.memory_space<vmem>>, vector<1x16x32xbf16>,
    %61 = vector.extract_strided_slice %10 {offsets = [0, 128], sizes = [16, 32], strides = [1, 1]} : vector<16x256xbf16> to vector<16x32xbf16>
    %c4 = arith.constant 4 : index
    %c0_46 = arith.constant 0 : index
    %c0_47 = arith.constant 0 : index
    %62 = vector.load %arg9[%c4, %c0_46, %c0_47] : memref<8x16x32xbf16, #tpu.memory_space<vmem>>, vector<1x16x32xbf16>
    %63 = vector.shape_cast %62 : vector<1x16x32xbf16> to vector<16x32xbf16>
    %64 = vector.shape_cast %61 : vector<16x32xbf16> to vector<1x16x32xbf16>
    tpu.vector_store %arg9[%c4, %c0_46, %c0_47], %64 {strides = array<i32>} : memref<8x16x32xbf16, #tpu.memory_space<vmem>>, vector<1x16x32xbf16>,
    %65 = vector.extract_strided_slice %11 {offsets = [0, 128], sizes = [16, 32], strides = [1, 1]} : vector<16x256xbf16> to vector<16x32xbf16>
    %c4_48 = arith.constant 4 : index
    %c0_49 = arith.constant 0 : index
    %c0_50 = arith.constant 0 : index
    %66 = vector.load %arg10[%c4_48, %c0_49, %c0_50] : memref<8x16x32xbf16, #tpu.memory_space<vmem>>, vector<1x16x32xbf16>
    %67 = vector.shape_cast %66 : vector<1x16x32xbf16> to vector<16x32xbf16>
    %68 = vector.shape_cast %65 : vector<16x32xbf16> to vector<1x16x32xbf16>
    tpu.vector_store %arg10[%c4_48, %c0_49, %c0_50], %68 {strides = array<i32>} : memref<8x16x32xbf16, #tpu.memory_space<vmem>>, vector<1x16x32xbf16>,
    %69 = vector.extract_strided_slice %12 {offsets = [0, 128], sizes = [16, 32], strides = [1, 1]} : vector<16x256xbf16> to vector<16x32xbf16>
    %c4_51 = arith.constant 4 : index
    %c0_52 = arith.constant 0 : index
    %c0_53 = arith.constant 0 : index
    %70 = vector.load %arg11[%c4_51, %c0_52, %c0_53] : memref<8x16x32xbf16, #tpu.memory_space<vmem>>, vector<1x16x32xbf16>
    %71 = vector.shape_cast %70 : vector<1x16x32xbf16> to vector<16x32xbf16>
    %72 = vector.shape_cast %69 : vector<16x32xbf16> to vector<1x16x32xbf16>
    tpu.vector_store %arg11[%c4_51, %c0_52, %c0_53], %72 {strides = array<i32>} : memref<8x16x32xbf16, #tpu.memory_space<vmem>>, vector<1x16x32xbf16>,
    %73 = vector.extract_strided_slice %10 {offsets = [0, 160], sizes = [16, 32], strides = [1, 1]} : vector<16x256xbf16> to vector<16x32xbf16>
    %c5 = arith.constant 5 : index
    %c0_54 = arith.constant 0 : index
    %c0_55 = arith.constant 0 : index
    %74 = vector.load %arg9[%c5, %c0_54, %c0_55] : memref<8x16x32xbf16, #tpu.memory_space<vmem>>, vector<1x16x32xbf16>
    %75 = vector.shape_cast %74 : vector<1x16x32xbf16> to vector<16x32xbf16>
    %76 = vector.shape_cast %73 : vector<16x32xbf16> to vector<1x16x32xbf16>
    tpu.vector_store %arg9[%c5, %c0_54, %c0_55], %76 {strides = array<i32>} : memref<8x16x32xbf16, #tpu.memory_space<vmem>>, vector<1x16x32xbf16>,
    %77 = vector.extract_strided_slice %11 {offsets = [0, 160], sizes = [16, 32], strides = [1, 1]} : vector<16x256xbf16> to vector<16x32xbf16>
    %c5_56 = arith.constant 5 : index
    %c0_57 = arith.constant 0 : index
    %c0_58 = arith.constant 0 : index
    %78 = vector.load %arg10[%c5_56, %c0_57, %c0_58] : memref<8x16x32xbf16, #tpu.memory_space<vmem>>, vector<1x16x32xbf16>
    %79 = vector.shape_cast %78 : vector<1x16x32xbf16> to vector<16x32xbf16>
    %80 = vector.shape_cast %77 : vector<16x32xbf16> to vector<1x16x32xbf16>
    tpu.vector_store %arg10[%c5_56, %c0_57, %c0_58], %80 {strides = array<i32>} : memref<8x16x32xbf16, #tpu.memory_space<vmem>>, vector<1x16x32xbf16>,
    %81 = vector.extract_strided_slice %12 {offsets = [0, 160], sizes = [16, 32], strides = [1, 1]} : vector<16x256xbf16> to vector<16x32xbf16>
    %c5_59 = arith.constant 5 : index
    %c0_60 = arith.constant 0 : index
    %c0_61 = arith.constant 0 : index
    %82 = vector.load %arg11[%c5_59, %c0_60, %c0_61] : memref<8x16x32xbf16, #tpu.memory_space<vmem>>, vector<1x16x32xbf16>
    %83 = vector.shape_cast %82 : vector<1x16x32xbf16> to vector<16x32xbf16>
    %84 = vector.shape_cast %81 : vector<16x32xbf16> to vector<1x16x32xbf16>
    tpu.vector_store %arg11[%c5_59, %c0_60, %c0_61], %84 {strides = array<i32>} : memref<8x16x32xbf16, #tpu.memory_space<vmem>>, vector<1x16x32xbf16>,
    %85 = vector.extract_strided_slice %10 {offsets = [0, 192], sizes = [16, 32], strides = [1, 1]} : vector<16x256xbf16> to vector<16x32xbf16>
    %c6 = arith.constant 6 : index
    %c0_62 = arith.constant 0 : index
    %c0_63 = arith.constant 0 : index
    %86 = vector.load %arg9[%c6, %c0_62, %c0_63] : memref<8x16x32xbf16, #tpu.memory_space<vmem>>, vector<1x16x32xbf16>
    %87 = vector.shape_cast %86 : vector<1x16x32xbf16> to vector<16x32xbf16>
    %88 = vector.shape_cast %85 : vector<16x32xbf16> to vector<1x16x32xbf16>
    tpu.vector_store %arg9[%c6, %c0_62, %c0_63], %88 {strides = array<i32>} : memref<8x16x32xbf16, #tpu.memory_space<vmem>>, vector<1x16x32xbf16>,
    %89 = vector.extract_strided_slice %11 {offsets = [0, 192], sizes = [16, 32], strides = [1, 1]} : vector<16x256xbf16> to vector<16x32xbf16>
    %c6_64 = arith.constant 6 : index
    %c0_65 = arith.constant 0 : index
    %c0_66 = arith.constant 0 : index
    %90 = vector.load %arg10[%c6_64, %c0_65, %c0_66] : memref<8x16x32xbf16, #tpu.memory_space<vmem>>, vector<1x16x32xbf16>
    %91 = vector.shape_cast %90 : vector<1x16x32xbf16> to vector<16x32xbf16>
    %92 = vector.shape_cast %89 : vector<16x32xbf16> to vector<1x16x32xbf16>
    tpu.vector_store %arg10[%c6_64, %c0_65, %c0_66], %92 {strides = array<i32>} : memref<8x16x32xbf16, #tpu.memory_space<vmem>>, vector<1x16x32xbf16>,
    %93 = vector.extract_strided_slice %12 {offsets = [0, 192], sizes = [16, 32], strides = [1, 1]} : vector<16x256xbf16> to vector<16x32xbf16>
    %c6_67 = arith.constant 6 : index
    %c0_68 = arith.constant 0 : index
    %c0_69 = arith.constant 0 : index
    %94 = vector.load %arg11[%c6_67, %c0_68, %c0_69] : memref<8x16x32xbf16, #tpu.memory_space<vmem>>, vector<1x16x32xbf16>
    %95 = vector.shape_cast %94 : vector<1x16x32xbf16> to vector<16x32xbf16>
    %96 = vector.shape_cast %93 : vector<16x32xbf16> to vector<1x16x32xbf16>
    tpu.vector_store %arg11[%c6_67, %c0_68, %c0_69], %96 {strides = array<i32>} : memref<8x16x32xbf16, #tpu.memory_space<vmem>>, vector<1x16x32xbf16>,
    %97 = vector.extract_strided_slice %10 {offsets = [0, 224], sizes = [16, 32], strides = [1, 1]} : vector<16x256xbf16> to vector<16x32xbf16>
    %c7 = arith.constant 7 : index
    %c0_70 = arith.constant 0 : index
    %c0_71 = arith.constant 0 : index
    %98 = vector.load %arg9[%c7, %c0_70, %c0_71] : memref<8x16x32xbf16, #tpu.memory_space<vmem>>, vector<1x16x32xbf16>
    %99 = vector.shape_cast %98 : vector<1x16x32xbf16> to vector<16x32xbf16>
    %100 = vector.shape_cast %97 : vector<16x32xbf16> to vector<1x16x32xbf16>
    tpu.vector_store %arg9[%c7, %c0_70, %c0_71], %100 {strides = array<i32>} : memref<8x16x32xbf16, #tpu.memory_space<vmem>>, vector<1x16x32xbf16>,
    %101 = vector.extract_strided_slice %11 {offsets = [0, 224], sizes = [16, 32], strides = [1, 1]} : vector<16x256xbf16> to vector<16x32xbf16>
    %c7_72 = arith.constant 7 : index
    %c0_73 = arith.constant 0 : index
    %c0_74 = arith.constant 0 : index
    %102 = vector.load %arg10[%c7_72, %c0_73, %c0_74] : memref<8x16x32xbf16, #tpu.memory_space<vmem>>, vector<1x16x32xbf16>
    %103 = vector.shape_cast %102 : vector<1x16x32xbf16> to vector<16x32xbf16>
    %104 = vector.shape_cast %101 : vector<16x32xbf16> to vector<1x16x32xbf16>
    tpu.vector_store %arg10[%c7_72, %c0_73, %c0_74], %104 {strides = array<i32>} : memref<8x16x32xbf16, #tpu.memory_space<vmem>>, vector<1x16x32xbf16>,
    %105 = vector.extract_strided_slice %12 {offsets = [0, 224], sizes = [16, 32], strides = [1, 1]} : vector<16x256xbf16> to vector<16x32xbf16>
    %c7_75 = arith.constant 7 : index
    %c0_76 = arith.constant 0 : index
    %c0_77 = arith.constant 0 : index
    %106 = vector.load %arg11[%c7_75, %c0_76, %c0_77] : memref<8x16x32xbf16, #tpu.memory_space<vmem>>, vector<1x16x32xbf16>
    %107 = vector.shape_cast %106 : vector<1x16x32xbf16> to vector<16x32xbf16>
    %108 = vector.shape_cast %105 : vector<16x32xbf16> to vector<1x16x32xbf16>
    tpu.vector_store %arg11[%c7_75, %c0_76, %c0_77], %108 {strides = array<i32>} : memref<8x16x32xbf16, #tpu.memory_space<vmem>>, vector<1x16x32xbf16>,
    %cst_78 = arith.constant 0.000000e+00 : f32
    %109 = vector.broadcast %cst_78 : f32 to vector<16x256xf32>
    %c0_79 = arith.constant 0 : index
    %c0_80 = arith.constant 0 : index
    %110 = vector.load %arg12[%c0_79, %c0_80] : memref<16x256xf32, #tpu.memory_space<vmem>>, vector<16x256xf32>
    tpu.vector_store %arg12[%c0_79, %c0_80], %109 {strides = array<i32>} : memref<16x256xf32, #tpu.memory_space<vmem>>, vector<16x256xf32>,
    %c0_i32 = arith.constant 0 : i32
    %c8_i32 = arith.constant 8 : i32
    %111 = arith.addi %c0_i32, %c8_i32 : i32
    %c1_i32 = arith.constant 1 : i32
    scf.for %arg13 = %c0_i32 to %111 step %c1_i32  : i32 {
      %119 = arith.index_cast %arg13 : i32 to index
      %c0_89 = arith.constant 0 : index
      %c0_90 = arith.constant 0 : index
      %120 = vector.load %arg9[%119, %c0_89, %c0_90] : memref<8x16x32xbf16, #tpu.memory_space<vmem>>, vector<1x16x32xbf16>
      %121 = vector.shape_cast %120 : vector<1x16x32xbf16> to vector<16x32xbf16>
      %122 = arith.index_cast %arg13 : i32 to index
      %c0_91 = arith.constant 0 : index
      %c0_92 = arith.constant 0 : index
      %123 = vector.load %arg10[%122, %c0_91, %c0_92] : memref<8x16x32xbf16, #tpu.memory_space<vmem>>, vector<1x16x32xbf16>
      %124 = vector.shape_cast %123 : vector<1x16x32xbf16> to vector<16x32xbf16>
      %125 = arith.index_cast %arg13 : i32 to index
      %c0_93 = arith.constant 0 : index
      %c0_94 = arith.constant 0 : index
      %126 = vector.load %arg11[%125, %c0_93, %c0_94] : memref<8x16x32xbf16, #tpu.memory_space<vmem>>, vector<1x16x32xbf16>
      %127 = vector.shape_cast %126 : vector<1x16x32xbf16> to vector<16x32xbf16>
      %cst_95 = arith.constant dense<0.000000e+00> : vector<16x16xf32>
      %128 = tpu.matmul %121, %124, %cst_95 {dimension_numbers = #tpu.dot_dimension_numbers<[1], [1], [0], [0], [0, 0, 1, 0], [], []>} : vector<16x32xbf16>, vector<16x32xbf16>, vector<16x16xf32> -> vector<16x16xf32>
      %cst_96 = arith.constant dense<0xFF800000> : vector<16xf32>
      %129 = vector.multi_reduction <maximumf>, %128, %cst_96 [1] : vector<16x16xf32> to vector<16xf32>
      %130 = vector.shape_cast %129 : vector<16xf32> to vector<16x1xf32>
      %131 = vector.broadcast %130 : vector<16x1xf32> to vector<16x16xf32>
      %132 = arith.subf %128, %131 : vector<16x16xf32>
      %133 = math.exp %132 : vector<16x16xf32>
      %cst_97 = arith.constant dense<0.000000e+00> : vector<16xf32>
      %134 = vector.multi_reduction <add>, %133, %cst_97 [1] : vector<16x16xf32> to vector<16xf32>
      %135 = vector.shape_cast %134 : vector<16xf32> to vector<16x1xf32>
      %136 = arith.truncf %133 : vector<16x16xf32> to vector<16x16xbf16>
      %cst_98 = arith.constant dense<0.000000e+00> : vector<16x32xf32>
      %137 = tpu.matmul %136, %127, %cst_98 {dimension_numbers = #tpu.dot_dimension_numbers<[1], [0], [0], [1], [0, 0, 1, 1], [], []>} : vector<16x16xbf16>, vector<16x32xbf16>, vector<16x32xf32> -> vector<16x32xf32>
      %138 = tpu.reciprocal %135 {approx = true} : vector<16x1xf32> -> vector<16x1xf32>
      %139 = vector.broadcast %138 : vector<16x1xf32> to vector<16x32xf32>
      %140 = arith.mulf %137, %139 : vector<16x32xf32>
      %c32_i32 = arith.constant 32 : i32
      %141 = arith.muli %arg13, %c32_i32 : i32
      %142 = tpu.assume_multiple %141, 32 : i32
      %143 = arith.index_cast %142 : i32 to index
      %c0_99 = arith.constant 0 : index
      %144 = vector.load %arg6[%143, %c0_99] : memref<256x256xbf16, #tpu.memory_space<vmem>>, vector<32x256xbf16>
      %c0_100 = arith.constant 0 : index
      %c0_101 = arith.constant 0 : index
      %145 = vector.load %arg12[%c0_100, %c0_101] : memref<16x256xf32, #tpu.memory_space<vmem>>, vector<16x256xf32>
      %146 = arith.truncf %140 : vector<16x32xf32> to vector<16x32xbf16>
      %cst_102 = arith.constant dense<0.000000e+00> : vector<16x256xf32>
      %147 = tpu.matmul %146, %144, %cst_102 {dimension_numbers = #tpu.dot_dimension_numbers<[1], [0], [0], [1], [0, 0, 1, 1], [], []>} : vector<16x32xbf16>, vector<32x256xbf16>, vector<16x256xf32> -> vector<16x256xf32>
      %148 = arith.addf %145, %147 : vector<16x256xf32>
      %c0_103 = arith.constant 0 : index
      %c0_104 = arith.constant 0 : index
      %149 = vector.load %arg12[%c0_103, %c0_104] : memref<16x256xf32, #tpu.memory_space<vmem>>, vector<16x256xf32>
      tpu.vector_store %arg12[%c0_103, %c0_104], %148 {strides = array<i32>} : memref<16x256xf32, #tpu.memory_space<vmem>>, vector<16x256xf32>,
    }
    %c8_i32_81 = arith.constant 8 : i32
    %c0_82 = arith.constant 0 : index
    %c0_83 = arith.constant 0 : index
    %112 = vector.load %arg12[%c0_82, %c0_83] : memref<16x256xf32, #tpu.memory_space<vmem>>, vector<16x256xf32>
    %c0_84 = arith.constant 0 : index
    %c0_85 = arith.constant 0 : index
    %113 = vector.load %arg7[%c0_84, %c0_85] : memref<1x256xf32, #tpu.memory_space<vmem>>, vector<1x256xf32>
    %114 = vector.broadcast %113 : vector<1x256xf32> to vector<16x256xf32>
    %115 = arith.addf %112, %114 : vector<16x256xf32>
    %c0_86 = arith.constant 0 : index
    %c0_87 = arith.constant 0 : index
    %c0_88 = arith.constant 0 : index
    %116 = vector.load %arg8[%c0_86, %c0_87, %c0_88] : memref<1x16x256xf32, #tpu.memory_space<vmem>>, vector<1x16x256xf32>
    %117 = vector.shape_cast %116 : vector<1x16x256xf32> to vector<16x256xf32>
    %118 = vector.shape_cast %115 : vector<16x256xf32> to vector<1x16x256xf32>
    tpu.vector_store %arg8[%c0_86, %c0_87, %c0_88], %118 {strides = array<i32>} : memref<1x16x256xf32, #tpu.memory_space<vmem>>, vector<1x16x256xf32>,
    return
  }
  func.func @transform_0(%arg0: i32) -> (i32, i32, i32) {
    %c0_i32 = arith.constant 0 : i32
    %c0_i32_0 = arith.constant 0 : i32
    %c0_i32_1 = arith.constant 0 : i32
    return %arg0, %c0_i32, %c0_i32_0 : i32, i32, i32
  }
  func.func @transform_1(%arg0: i32) -> (i32, i32, i32) {
    %c0_i32 = arith.constant 0 : i32
    %c0_i32_0 = arith.constant 0 : i32
    %c0_i32_1 = arith.constant 0 : i32
    return %arg0, %c0_i32, %c0_i32_0 : i32, i32, i32
  }
  func.func @transform_2(%arg0: i32) -> (i32, i32) {
    %c0_i32 = arith.constant 0 : i32
    %c0_i32_0 = arith.constant 0 : i32
    %c0_i32_1 = arith.constant 0 : i32
    return %c0_i32, %c0_i32_0 : i32, i32
  }
  func.func @transform_3(%arg0: i32) -> (i32, i32) {
    %c0_i32 = arith.constant 0 : i32
    %c0_i32_0 = arith.constant 0 : i32
    %c0_i32_1 = arith.constant 0 : i32
    return %c0_i32, %c0_i32_0 : i32, i32
  }
  func.func @transform_4(%arg0: i32) -> (i32, i32) {
    %c0_i32 = arith.constant 0 : i32
    %c0_i32_0 = arith.constant 0 : i32
    %c0_i32_1 = arith.constant 0 : i32
    return %c0_i32, %c0_i32_0 : i32, i32
  }
  func.func @transform_5(%arg0: i32) -> (i32, i32) {
    %c0_i32 = arith.constant 0 : i32
    %c0_i32_0 = arith.constant 0 : i32
    %c0_i32_1 = arith.constant 0 : i32
    return %c0_i32, %c0_i32_0 : i32, i32
  }
  func.func @transform_6(%arg0: i32) -> (i32, i32) {
    %c0_i32 = arith.constant 0 : i32
    %c0_i32_0 = arith.constant 0 : i32
    %c0_i32_1 = arith.constant 0 : i32
    return %c0_i32, %c0_i32_0 : i32, i32
  }
  func.func @transform_7(%arg0: i32) -> (i32, i32, i32) {
    %c0_i32 = arith.constant 0 : i32
    %c0_i32_0 = arith.constant 0 : i32
    %c0_i32_1 = arith.constant 0 : i32
    return %arg0, %c0_i32, %c0_i32_0 : i32, i32, i32
  }
}

</mosaic_0001>

<bundles_post_ra>
// kernel: tpu_custom_call.1
= control target key start
LH: loop header
LB: loop body
LE: loop exit
PB: predicated region body
PF: predicated region fallthrough
CT: control target
= control target key end

     0   :  { %s3067_s0 = inlined_call_operand.hbm [shape: bf16[4,16,256], index: 0, kind: input, shape index: {}]   ;;  %s3068_s1 = inlined_call_operand.hbm [shape: bf16[4,16,256], index: 1, kind: input, shape index: {}]   ;;  %s3069_s2 = inlined_call_operand.hbm [shape: bf16[256,256], index: 2, kind: input, shape index: {}]   ;;  %s3070_s3 = inlined_call_operand.hbm [shape: bf16[256,256], index: 3, kind: input, shape index: {}]   ;;  %s3071_s4 = inlined_call_operand.hbm [shape: bf16[256,256], index: 4, kind: input, shape index: {}]   ;;  %s3072_s5 = inlined_call_operand.hbm [shape: bf16[256,256], index: 5, kind: input, shape index: {}]   ;;  %s3073_s6 = inlined_call_operand.vmem [shape: f32[1,256], index: 6, kind: input, shape index: {}]   ;;  %s3074_s7 = inlined_call_operand.hbm [shape: f32[4,16,256], index: 7, kind: output, shape index: {}]  }
   0x1   :  { %3079 = sst [smem:[#allocation25_spill]] %s3067_s0 }
   0x2   :  { %3080 = sst [smem:[#allocation26_spill]] %s3069_s2 }
   0x3   :  { %3081 = sst [smem:[#allocation27_spill]] %s3070_s3 }
   0x4   :  { %3082 = sst [smem:[#allocation28_spill]] %s3071_s4 }
   0x5   :  { %3083 = sst [smem:[#allocation29_spill]] %s3072_s5 }
   0x6   :  { %12 = vsyncpa [#allocation7], 0 }
   0x7   :  { %14 = vsyncpa [#allocation7 + $0x1], 0 }
   0x8   :  { %15 = vsyncpa [#allocation10], 0 }
   0x9   :  { %17 = vsyncpa [#allocation10 + $0x1], 0 }
   0xa   :  { %18 = vsyncpa [#allocation13], 0 }
   0xb   :  { %19 = vsyncpa [#allocation16], 0 }
   0xc   :  { %20 = vsyncpa [#allocation8], 0 }
   0xd   :  { %22 = vsyncpa [#allocation8 + $0x1], 0  ;;  %s2735_s24 = smov 0   ;;  %s2737_s25 = smov 0  }
   0xe   :  { %s2739_s26 = smov 0   ;;  %s2741_s27 = smov 0  }
   0xf LB: > { %s2756_s28 = sadd.s32 4294967295, %s2677_s27   ;;  %s1716_s29 = sadd.s32 4294967294, %s2677_s27   ;;  %s2677_s27 = sphi %s2741_s27, %s3102_s27   ;;  %s2673_s26 = sphi %s2739_s26, %s3101_s26   ;;  %s2669_s25 = sphi %s2737_s25, %s3100_s25   ;;  %s2665_s24 = sphi %s2735_s24, %s3099_s24  }
  0x10   : > { %p48_p0 = scmp.ne.s32.totalorder %s2669_s25, %s2665_s24  ;;  %p49_p1 = scmp.eq.s32.totalorder %s2756_s28, 0 }
  0x11   : > { %p203_p2 = scmp.eq.s32.totalorder %s2756_s28, 3  ;;  %p209_p3 = scmp.eq.s32.totalorder %s1716_s29, 3 }
  0x12   : > { %p2765_p4 = por %p49_p1, %p48_p0  ;;  %p1717_p5 = scmp.ge.s32.totalorder %s2677_s27, 1 }
  0x13   : > { %p2770_p6 = por %p209_p3, %p48_p0  ;;  %p216_p7 = scmp.lt.s32.totalorder %s2677_s27, 5 }
  0x14   : > { %s3086_s2 = sld [smem:[#allocation26_spill]]  ;;  %s2683_s13 = smov [#allocation11]  }
  0x15   : > { %p2778_p8 = pnand %p1717_p5, %p216_p7  ;;  %s229_s14 = sshll.u32 %s2683_s13, 4  ;;  %s230_s14 = int_to_ptr.vmem [resolvable:$true] %s229_s14 }
  0x16   : > { %s3089_s3 = sld [smem:[#allocation27_spill]]  ;;  %s3075_s19 = smov 128  }
  0x17   : > { %p2317_p9 = pneg %p2778_p8  ;;  %s3077_s20 = smov 8  }
  0x18   : > { %s2686_s21 = smov [#allocation12]   ;;  %s3090_s4 = sld [smem:[#allocation28_spill]] }
  0x19   : > { %p2786_p10 = pnand %p2317_p9, %p49_p1  ;;  %s243_s22 = sshll.u32 %s2686_s21, 4  ;;  %s244_s22 = int_to_ptr.vmem [resolvable:$true] %s243_s22 }
  0x1a   : > { %s227_s11 = sshll.u32 %s3086_s2, 4  ;;  %s3091_s5 = sld [smem:[#allocation29_spill]]  ;;  %s228_s11 = int_to_ptr.hbm [resolvable:$true] %s227_s11 }
  0x1b   : > { %2320 = dma.hbm_to_vmem [thread:$0]  (!%p2786_p10), %s228_s11, 4096, %s230_s14, [#allocation10], %s3075_s19, %s3075_s19, %s3077_s20  }
  0x1c   : > { %s241_s18 = sshll.u32 %s3089_s3, 4  ;;  %s2687_s14 = smov [#allocation14]   ;;  %s242_s18 = int_to_ptr.hbm [resolvable:$true] %s241_s18 }
  0x1d   : > { %2323 = dma.hbm_to_vmem [thread:$0]  (!%p2786_p10), %s242_s18, 4096, %s244_s22, [#allocation13], %s3075_s19, %s3075_s19, %s3077_s20  }
  0x1e   : > { %s255_s9 = sshll.u32 %s3090_s4, 4  ;;  %s257_s16 = sshll.u32 %s2687_s14, 4  ;;  %s256_s9 = int_to_ptr.hbm [resolvable:$true] %s255_s9  ;;  %s258_s16 = int_to_ptr.vmem [resolvable:$true] %s257_s16 }
  0x1f   : > { %2326 = dma.hbm_to_vmem [thread:$0]  (!%p2786_p10), %s256_s9, 4096, %s258_s16, [#allocation13], %s3075_s19, %s3075_s19, %s3077_s20  }
  0x20   : > { %s269_s13 = sshll.u32 %s3091_s5, 4  ;;  %s2688_s17 = smov [#allocation15]   ;;  %s270_s13 = int_to_ptr.hbm [resolvable:$true] %s269_s13 }
  0x21   : > { %s271_s18 = sshll.u32 %s2688_s17, 4  ;;  %s2820_s21 = sadd.s32 1, %s2677_s27   ;;  %s272_s18 = int_to_ptr.vmem [resolvable:$true] %s271_s18 }
  0x22   : > { %2329 = dma.hbm_to_vmem [thread:$0]  (!%p2786_p10), %s270_s13, 4096, %s272_s18, [#allocation16], %s3075_s19, %s3075_s19, %s3077_s20  }
  0x23   : > { %s35_s22 = sadd.s32 1, %s2673_s26  ;;  %s32_s23 = ssub.s32 %s2677_s27, %s2820_s21 }
  0x24   : > { %p42_p11 = scmp.ne.s32.totalorder %s2673_s26, %s2669_s25  ;;  %p33_p12 = scmp.eq.s32.totalorder %s32_s23, 0 }
  0x25   : > { %p43_p13 = scmp.eq.s32.totalorder %s2677_s27, 0  ;;  %p2345_p3 = scmp.lt.s32.totalorder %s2677_s27, 4 }
  0x26   : > { %p2830_p0 = por %p203_p2, %p42_p11  ;;  %s288_s15 = sand.u32 1, %s2673_s26  }
  0x27   : > { %s2836_s9 = scalar_select %p33_p12, %s2673_s26, %s35_s22  }
  0x28   : > { %p44_p5 = por %p43_p13, %p42_p11  ;;  %s2839_s10 = sshll.u32 %s288_s15, 4 }
  0x29   : > { %3093 = sst [smem:[#allocation24_spill]] %s2836_s9  ;;  %s2181_s11 = sshll.u32 %s2677_s27, 4 }
  0x2a   : > { %s3094_s0 = sld [smem:[#allocation25_spill]]  ;;  %s292_s17 = scalar_lea.vmem [#allocation6], %s2839_s10 }
  0x2b   : > { %s300_s18 = sshll.u32 %s292_s17, 4  ;;  %p2846_p2 = pnand %p2345_p3, %p44_p5  ;;  %s301_s18 = int_to_ptr.vmem [resolvable:$true] %s300_s18 }
  0x2c   : > { %s319_s2 = scalar_lea.hbm %s3068_s1, %s2181_s11  ;;  %s289_s4 = scalar_lea.sflag [#allocation7], %s288_s15 }
  0x2d   : > { %s320_s3 = sshll.u32 %s319_s2, 4  ;;  %p2535_p9 = pneg %p2846_p2  ;;  %s321_s3 = int_to_ptr.hbm [resolvable:$true] %s320_s3 }
  0x30   : > { %s297_s16 = scalar_lea.hbm %s3094_s0, %s2181_s11  ;;  %s2538_s17 = scalar_lea.hbm %s3094_s0, 64 }
  0x31   : > { %s298_s23 = sshll.u32 %s297_s16, 4  ;;  %s299_s23 = int_to_ptr.hbm [resolvable:$true] %s298_s23 }
  0x32   : > { %s2531_s5 = sshra.s32 %s299_s23, 4  ;;  %s2532_s5 = int_to_ptr.hbm [resolvable:$true] %s2531_s5 }
  0x33   : > { %s2533_s13 = scalar_lea.hbm %s2532_s5, 16  ;;  %p2539_p12 = scmp.lt.s32.totalorder %s2532_s5, %s3094_s0 }
  0x34   : > { %p2534_p7 = scmp.ne.s32.totalorder %s2532_s5, %s2533_s13  ;;  %p2540_p13 = scmp.lt.s32.totalorder %s2538_s17, %s2533_s13 }
  0x36   : > { %p2536_p10 = pnand %p2535_p9, %p2534_p7  ;;  %p2541_p3 = por %p2540_p13, %p2539_p12 }
  0x38   : > { %p2537_p11 = pneg %p2536_p10 }
  0x3a   : > { %p2542_p5 = pnand %p2541_p3, %p2537_p11 }
  0x3c   : > { %2545 = shalt.err (!%p2542_p5)
}
  0x3d   : > { %s3096_s2 = smov 8   ;;  %s3097_s15 = smov 128  }
  0x3e   : > { %2333 = dma.hbm_to_vmem [thread:$0]  (!%p2846_p2), %s299_s23, 256, %s301_s18, %s289_s4, %s3097_s15, %s3097_s15, %s3096_s2  }
  0x3f   : > { %s314_s11 = scalar_lea.vmem [#allocation9], %s2839_s10  ;;  %s310_s16 = sand.u32 1, %s2677_s27  }
  0x40   : > { %s322_s14 = sshll.u32 %s314_s11, 4  ;;  %s311_s20 = scalar_lea.sflag [#allocation10], %s310_s16  ;;  %s323_s14 = int_to_ptr.vmem [resolvable:$true] %s322_s14 }
  0x41   : > { %s2561_s5 = sshra.s32 %s321_s3, 4  ;;  %s2568_s0 = scalar_lea.hbm %s3068_s1, 64  ;;  %s2562_s5 = int_to_ptr.hbm [resolvable:$true] %s2561_s5 }
  0x42   : > { %s2563_s13 = scalar_lea.hbm %s2562_s5, 16  ;;  %p2569_p12 = scmp.lt.s32.totalorder %s2562_s5, %s3068_s1 }
  0x43   : > { %p2564_p7 = scmp.ne.s32.totalorder %s2562_s5, %s2563_s13  ;;  %p2570_p13 = scmp.lt.s32.totalorder %s2568_s0, %s2563_s13 }
  0x45   : > { %p2566_p10 = pnand %p2564_p7, %p2535_p9  ;;  %p2571_p3 = por %p2570_p13, %p2569_p12 }
  0x47   : > { %p2567_p11 = pneg %p2566_p10 }
  0x49   : > { %p2572_p5 = pnand %p2571_p3, %p2567_p11 }
  0x4b   : > { %2575 = shalt.err (!%p2572_p5)
}
  0x4c   : > { %2336 = dma.hbm_to_vmem [thread:$0]  (!%p2846_p2), %s321_s3, 256, %s323_s14, %s311_s20, %s3097_s15, %s3097_s15, %s3096_s2  }
  0x4d   : > { %334 = sbr.rel (%p2778_p8) target bundleno = 1026 (0x402), region = 48  ;;  %s2888_s10 = sand.u32 (!%p2778_p8), 1, %s2669_s25  }
  0x4e   : > { %s1730_s9 = sshll.u32 (!%p2778_p8), %s2888_s10, 4  ;;  %s337_s0 = scalar_lea.sflag (!%p2778_p8), [#allocation7], %s2888_s10 }
  0x4f   : > { %s2892_s18 = scalar_lea.vmem (!%p2778_p8), [#allocation6], %s1730_s9 }
  0x52   : > { %2640 = dma.done.wait (%p2765_p4), %s337_s0, 256  }
  0x53   : > { %2642 = vsyncadd (%p2765_p4), %s337_s0, 4294967040  ;;  %s346_s3 = sand.u32 1, %s2756_s28   ;;  %s2899_s19 = scalar_lea.vmem [#allocation9], %s1730_s9 }
  0x54   : > { %s347_s12 = scalar_lea.sflag [#allocation10], %s346_s3 }
  0x55   : > { %2644 = dma.done.wait (%p2765_p4), %s347_s12, 256  }
  0x56   : > { %2646 = vsyncadd (%p2765_p4), %s347_s12, 4294967040 }
  0x57   : > { %2648 = dma.done.wait (%p49_p1), [#allocation10], 4096  }
  0x58   : > { %2650 = vsyncadd (%p49_p1), [#allocation10], 4294963200 }
  0x59   : > { %2652 = dma.done.wait (%p49_p1), [#allocation13], 8192  }
  0x5a   : > { %2654 = vsyncadd (%p49_p1), [#allocation13], 4294959104 }
  0x5b   : > { %2656 = dma.done.wait (%p49_p1), [#allocation16], 4096  }
  0x5c   : > { %2658 = vsyncadd (%p49_p1), [#allocation16], 4294963200  ;;  %s1736_s30 = sshll.u32 %s2888_s10, 5  ;;  %v2689_v0 = vmov 0.0   ;;  %v1803_v1 = vld [vmem:[#allocation11 + $0x70] sm:$0xf] }
  0x5d   : > { %1360 = vst [vmem:[#allocation5 + $0x10] sm:$0xff] %v2689_v0  ;;  %v2202_v2 = vld [vmem:[#allocation11 + $0x74] sm:$0xf0]  ;;  %v1867_v3 = vld [vmem:[#allocation11 + $0xf0] sm:$0xf]  ;;  %vm1182_vm0 = vcmask 257024  }
  0x5e   : > { %1361 = vst [vmem:[#allocation5] sm:$0xff] %v2689_v0  ;;  %v1804_v4 = vor.u32 %v2202_v2, %v1803_v1  ;;  %v2218_v5 = vld [vmem:[#allocation11 + $0xf4] sm:$0xf0]  ;;  %v2201_v6 = vld [vmem:[#allocation11 + $0x74] sm:$0xf]  ;;  %s2690_s23 = smov 96  }
  0x5f   : > { %1362 = vst [vmem:[#allocation5 + $0x18] sm:$0xff] %v2689_v0  ;;  %v1805_v7 = vld [vmem:[#allocation11 + $0x78] sm:$0xf0]  ;;  %v1868_v8 = vor.u32 %v2218_v5, %v1867_v3  ;;  %v2217_v10 = vld [vmem:[#allocation11 + $0xf4] sm:$0xf]  ;;  %s2691_s2 = smov 64  }
  0x60   : > { %1363 = vst [vmem:[#allocation5 + $0x8] sm:$0xff] %v2689_v0  ;;  %v1808_v9 = vor.u32 %v2201_v6, %v1805_v7  ;;  %v1869_v11 = vld [vmem:[#allocation11 + $0xf8] sm:$0xf0]  ;;  %v1795_v12 = vld [vmem:[#allocation11 + $0x60] sm:$0xf]  ;;  %614 = vmatpush.bf16.msra.mxu0 %v1804_v4  ;;  %s2692_s15 = smov 32  }
  0x61   : > { %v1872_v13 = vor.u32 %v2217_v10, %v1869_v11  ;;  %v2200_v14 = vld [vmem:[#allocation11 + $0x64] sm:$0xf0]  ;;  %v1859_v15 = vld [vmem:[#allocation11 + $0xe0] sm:$0xf]  ;;  %628 = vmatpush.bf16.msra.mxu1 %v1868_v8  ;;  %v2199_v19 = vld [vmem:[#allocation11 + $0x64] sm:$0xf] }
  0x62   : > { %v2216_v16 = vld [vmem:[#allocation11 + $0xe4] sm:$0xf0]  ;;  %642 = vmatpush.bf16.msra.mxu2 %v1808_v9  ;;  %v1796_v17 = vor.u32 %v2200_v14, %v1795_v12  ;;  %v1797_v20 = vld [vmem:[#allocation11 + $0x68] sm:$0xf0]  ;;  %v2215_v21 = vld [vmem:[#allocation11 + $0xe4] sm:$0xf] }
  0x63   : > { %v1860_v18 = vor.u32 %v2216_v16, %v1859_v15  ;;  %656 = vmatpush.bf16.msra.mxu3 %v1872_v13  ;;  %v1800_v22 = vor.u32 %v2199_v19, %v1797_v20  ;;  %v1861_v23 = vld [vmem:[#allocation11 + $0xe8] sm:$0xf0]  ;;  %v1787_v24 = vld [vmem:[#allocation11 + $0x50] sm:$0xf]  ;;  %v2198_v25 = vld [vmem:[#allocation11 + $0x54] sm:$0xf0] }
  0x64   : > { %v1864_v26 = vor.u32 %v2215_v21, %v1861_v23  ;;  %v1851_v27 = vld [vmem:[#allocation11 + $0xd0] sm:$0xf]  ;;  %v2214_v28 = vld [vmem:[#allocation11 + $0xd4] sm:$0xf0]  ;;  %v2197_v29 = vld [vmem:[#allocation11 + $0x54] sm:$0xf]  ;;  %615 = vmatpush.bf16.msra.mxu0 %v1796_v17  ;;  %v1788_v30 = vor.u32 %v2198_v25, %v1787_v24 }
  0x65   : > { %v1789_v31 = vld [vmem:[#allocation11 + $0x58] sm:$0xf0]  ;;  %v2213_v32 = vld [vmem:[#allocation11 + $0xd4] sm:$0xf]  ;;  %629 = vmatpush.bf16.msra.mxu1 %v1860_v18  ;;  %v1852_v34 = vor.u32 %v2214_v28, %v1851_v27  ;;  %v1779_v36 = vld [vmem:[#allocation11 + $0x40] sm:$0xf] }
  0x66   : > { %v1853_v33 = vld [vmem:[#allocation11 + $0xd8] sm:$0xf0]  ;;  %643 = vmatpush.bf16.msra.mxu2 %v1800_v22  ;;  %v1792_v35 = vor.u32 %v2197_v29, %v1789_v31  ;;  %v2196_v37 = vld [vmem:[#allocation11 + $0x44] sm:$0xf0]  ;;  %v1843_v38 = vld [vmem:[#allocation11 + $0xc0] sm:$0xf] }
  0x67   : > { %657 = vmatpush.bf16.msra.mxu3 %v1864_v26  ;;  %v1856_v39 = vor.u32 %v2213_v32, %v1853_v33  ;;  %v2212_v40 = vld [vmem:[#allocation11 + $0xc4] sm:$0xf0]  ;;  %v2195_v41 = vld [vmem:[#allocation11 + $0x44] sm:$0xf]  ;;  %v1781_v42 = vld [vmem:[#allocation11 + $0x48] sm:$0xf0]  ;;  %v1780_v45 = vor.u32 %v2196_v37, %v1779_v36 }
  0x68   : > { %v2211_v43 = vld [vmem:[#allocation11 + $0xc4] sm:$0xf]  ;;  %v1845_v44 = vld [vmem:[#allocation11 + $0xc8] sm:$0xf0]  ;;  %616 = vmatpush.bf16.msra.mxu0 %v1788_v30  ;;  %v1844_v46 = vor.u32 %v2212_v40, %v1843_v38  ;;  %v1784_v47 = vor.u32 %v2195_v41, %v1781_v42  ;;  %v1771_v48 = vld [vmem:[#allocation11 + $0x30] sm:$0xf] }
  0x69   : > { %630 = vmatpush.bf16.msra.mxu1 %v1852_v34  ;;  %v2194_v49 = vld [vmem:[#allocation11 + $0x34] sm:$0xf0]  ;;  %v1835_v50 = vld [vmem:[#allocation11 + $0xb0] sm:$0xf]  ;;  %v1848_v51 = vor.u32 %v2211_v43, %v1845_v44  ;;  %v2193_v53 = vld [vmem:[#allocation11 + $0x34] sm:$0xf] }
  0x6a   : > { %644 = vmatpush.bf16.msra.mxu2 %v1792_v35  ;;  %v2210_v52 = vld [vmem:[#allocation11 + $0xb4] sm:$0xf0]  ;;  %v1773_v54 = vld [vmem:[#allocation11 + $0x38] sm:$0xf0]  ;;  %v2209_v55 = vld [vmem:[#allocation11 + $0xb4] sm:$0xf]  ;;  %v1772_v57 = vor.u32 %v2194_v49, %v1771_v48 }
  0x6b   : > { %658 = vmatpush.bf16.msra.mxu3 %v1856_v39  ;;  %v1837_v56 = vld [vmem:[#allocation11 + $0xb8] sm:$0xf0]  ;;  %v1836_v58 = vor.u32 %v2210_v52, %v1835_v50  ;;  %v1776_v59 = vor.u32 %v2193_v53, %v1773_v54  ;;  %v1763_v60 = vld [vmem:[#allocation11 + $0x20] sm:$0xf]  ;;  %v2192_v61 = vld [vmem:[#allocation11 + $0x24] sm:$0xf0] }
  0x6c   : > { %617 = vmatpush.bf16.msra.mxu0 %v1780_v45  ;;  %v1827_v62 = vld [vmem:[#allocation11 + $0xa0] sm:$0xf]  ;;  %v1840_v63 = vor.u32 %v2209_v55, %v1837_v56  ;;  %v2208_v0 = vld [vmem:[#allocation11 + $0xa4] sm:$0xf0]  ;;  %v2191_v1 = vld [vmem:[#allocation11 + $0x24] sm:$0xf]  ;;  %v1764_v5 = vor.u32 %v2192_v61, %v1763_v60 }
  0x6d   : > { %631 = vmatpush.bf16.msra.mxu1 %v1844_v46  ;;  %v1765_v2 = vld [vmem:[#allocation11 + $0x28] sm:$0xf0]  ;;  %v2207_v3 = vld [vmem:[#allocation11 + $0xa4] sm:$0xf]  ;;  %v1828_v6 = vor.u32 %v2208_v0, %v1827_v62  ;;  %v1755_v8 = vld [vmem:[#allocation11 + $0x10] sm:$0xf] }
  0x6e   : > { %645 = vmatpush.bf16.msra.mxu2 %v1784_v47  ;;  %v1829_v4 = vld [vmem:[#allocation11 + $0xa8] sm:$0xf0]  ;;  %v1768_v7 = vor.u32 %v2191_v1, %v1765_v2  ;;  %v2190_v9 = vld [vmem:[#allocation11 + $0x14] sm:$0xf0]  ;;  %v1819_v10 = vld [vmem:[#allocation11 + $0x90] sm:$0xf] }
  0x6f   : > { %659 = vmatpush.bf16.msra.mxu3 %v1848_v51  ;;  %v1832_v11 = vor.u32 %v2207_v3, %v1829_v4  ;;  %v2206_v12 = vld [vmem:[#allocation11 + $0x94] sm:$0xf0]  ;;  %v2189_v13 = vld [vmem:[#allocation11 + $0x14] sm:$0xf]  ;;  %v1757_v14 = vld [vmem:[#allocation11 + $0x18] sm:$0xf0]  ;;  %v1756_v17 = vor.u32 %v2190_v9, %v1755_v8 }
  0x70   : > { %618 = vmatpush.bf16.msra.mxu0 %v1772_v57  ;;  %v2205_v15 = vld [vmem:[#allocation11 + $0x94] sm:$0xf]  ;;  %v1821_v16 = vld [vmem:[#allocation11 + $0x98] sm:$0xf0]  ;;  %v1747_v18 = vld [vmem:[#allocation11] sm:$0xf]  ;;  %v1820_v21 = vor.u32 %v2206_v12, %v1819_v10  ;;  %v1760_v22 = vor.u32 %v2189_v13, %v1757_v14 }
  0x71   : > { %632 = vmatpush.bf16.msra.mxu1 %v1836_v58  ;;  %v2188_v19 = vld [vmem:[#allocation11 + $0x4] sm:$0xf0]  ;;  %v1811_v20 = vld [vmem:[#allocation11 + $0x80] sm:$0xf]  ;;  %v2187_v24 = vld [vmem:[#allocation11 + $0x4] sm:$0xf]  ;;  %v1824_v26 = vor.u32 %v2205_v15, %v1821_v16 }
  0x72   : > { %646 = vmatpush.bf16.msra.mxu2 %v1776_v59  ;;  %v2204_v23 = vld [vmem:[#allocation11 + $0x84] sm:$0xf0]  ;;  %v1749_v25 = vld [vmem:[#allocation11 + $0x8] sm:$0xf0]  ;;  %v2203_v27 = vld [vmem:[#allocation11 + $0x84] sm:$0xf]  ;;  %v1748_v33 = vor.u32 %v2188_v19, %v1747_v18 }
  0x73   : > { %660 = vmatpush.bf16.msra.mxu3 %v1840_v63  ;;  %v1813_v28 = vld [vmem:[#allocation11 + $0x88] sm:$0xf0]  ;;  %v1939_v29 = vld [vmem:[#allocation12 + $0x70] sm:$0xf]  ;;  %v2234_v30 = vld [vmem:[#allocation12 + $0x74] sm:$0xf0]  ;;  %v1812_v37 = vor.u32 %v2204_v23, %v1811_v20  ;;  %v1752_v38 = vor.u32 %v2187_v24, %v1749_v25 }
  0x74   : > { %619 = vmatpush.bf16.msra.mxu0 %v1764_v5  ;;  %v2003_v31 = vld [vmem:[#allocation12 + $0xf0] sm:$0xf]  ;;  %v2250_v32 = vld [vmem:[#allocation12 + $0xf4] sm:$0xf0]  ;;  %v2233_v34 = vld [vmem:[#allocation12 + $0x74] sm:$0xf]  ;;  %v1816_v42 = vor.u32 %v2203_v27, %v1813_v28  ;;  %v1940_v43 = vor.u32 %v2234_v30, %v1939_v29 }
  0x75   : > { %633 = vmatpush.bf16.msra.mxu1 %v1828_v6  ;;  %v1941_v35 = vld [vmem:[#allocation12 + $0x78] sm:$0xf0]  ;;  %v2249_v36 = vld [vmem:[#allocation12 + $0xf4] sm:$0xf]  ;;  %v1739_v40 = vld [vmem:[%s2892_s18] sm:$0xf]  ;;  %v2004_v46 = vor.u32 %v2250_v32, %v2003_v31 }
  0x76   : > { %647 = vmatpush.bf16.msra.mxu2 %v1768_v7  ;;  %v2005_v39 = vld [vmem:[#allocation12 + $0xf8] sm:$0xf0]  ;;  %v2184_v41 = vld [vmem:[%s2892_s18 + $0x4] sm:$0xf0]  ;;  %v2183_v44 = vld [vmem:[%s2892_s18 + $0x4] sm:$0xf]  ;;  %v1944_v47 = vor.u32 %v2233_v34, %v1941_v35 }
  0x77   : > { %661 = vmatpush.bf16.msra.mxu3 %v1832_v11  ;;  %v1741_v45 = vld [vmem:[%s2892_s18 + $0x8] sm:$0xf0]  ;;  %v1931_v48 = vld [vmem:[#allocation12 + $0x60] sm:$0xf]  ;;  %v2232_v49 = vld [vmem:[#allocation12 + $0x64] sm:$0xf0]  ;;  %v2008_v51 = vor.u32 %v2249_v36, %v2005_v39  ;;  %v1740_v52 = vor.u32 %v2184_v41, %v1739_v40 }
  0x78   : > { %620 = vmatpush.bf16.msra.mxu0 %v1756_v17  ;;  %v1995_v50 = vld [vmem:[#allocation12 + $0xe0] sm:$0xf]  ;;  %v2248_v53 = vld [vmem:[#allocation12 + $0xe4] sm:$0xf0]  ;;  %v2231_v54 = vld [vmem:[#allocation12 + $0x64] sm:$0xf]  ;;  %v1744_v56 = vor.u32 %v2183_v44, %v1741_v45  ;;  %v1932_v59 = vor.u32 %v2232_v49, %v1931_v48 }
  0x79   : > { %634 = vmatpush.bf16.msra.mxu1 %v1820_v21  ;;  %v1933_v55 = vld [vmem:[#allocation12 + $0x68] sm:$0xf0]  ;;  %v2247_v57 = vld [vmem:[#allocation12 + $0xe4] sm:$0xf]  ;;  %v1996_v60 = vor.u32 %v2248_v53, %v1995_v50  ;;  %v1923_v62 = vld [vmem:[#allocation12 + $0x50] sm:$0xf] }
  0x7a   : > { %648 = vmatpush.bf16.msra.mxu2 %v1760_v22  ;;  %v1997_v58 = vld [vmem:[#allocation12 + $0xe8] sm:$0xf0]  ;;  %v1936_v61 = vor.u32 %v2231_v54, %v1933_v55  ;;  %v2230_v63 = vld [vmem:[#allocation12 + $0x54] sm:$0xf0]  ;;  %v1987_v0 = vld [vmem:[#allocation12 + $0xd0] sm:$0xf] }
  0x7b   : > { %662 = vmatpush.bf16.msra.mxu3 %v1824_v26  ;;  %v2000_v1 = vor.u32 %v2247_v57, %v1997_v58  ;;  %v2246_v2 = vld [vmem:[#allocation12 + $0xd4] sm:$0xf0]  ;;  %v2229_v3 = vld [vmem:[#allocation12 + $0x54] sm:$0xf]  ;;  %v1925_v4 = vld [vmem:[#allocation12 + $0x58] sm:$0xf0]  ;;  %v1924_v7 = vor.u32 %v2230_v63, %v1923_v62 }
  0x7c   : > { %621 = vmatpush.bf16.msra.mxu0 %v1748_v33  ;;  %v2245_v5 = vld [vmem:[#allocation12 + $0xd4] sm:$0xf]  ;;  %v1989_v6 = vld [vmem:[#allocation12 + $0xd8] sm:$0xf0]  ;;  %v1988_v8 = vor.u32 %v2246_v2, %v1987_v0  ;;  %v1928_v9 = vor.u32 %v2229_v3, %v1925_v4  ;;  %v1915_v10 = vld [vmem:[#allocation12 + $0x40] sm:$0xf] }
  0x7d   : > { %635 = vmatpush.bf16.msra.mxu1 %v1812_v37  ;;  %v2228_v11 = vld [vmem:[#allocation12 + $0x44] sm:$0xf0]  ;;  %v1979_v12 = vld [vmem:[#allocation12 + $0xc0] sm:$0xf]  ;;  %v1992_v13 = vor.u32 %v2245_v5, %v1989_v6  ;;  %v2227_v15 = vld [vmem:[#allocation12 + $0x44] sm:$0xf] }
  0x7e   : > { %649 = vmatpush.bf16.msra.mxu2 %v1752_v38  ;;  %v2244_v14 = vld [vmem:[#allocation12 + $0xc4] sm:$0xf0]  ;;  %v1917_v16 = vld [vmem:[#allocation12 + $0x48] sm:$0xf0]  ;;  %v2243_v17 = vld [vmem:[#allocation12 + $0xc4] sm:$0xf]  ;;  %v1916_v19 = vor.u32 %v2228_v11, %v1915_v10 }
  0x7f   : > { %663 = vmatpush.bf16.msra.mxu3 %v1816_v42  ;;  %622 = vmatmul.bf16.vlgmr.msra.gmra.mxu0 %v1740_v52  ;;  %v1981_v18 = vld [vmem:[#allocation12 + $0xc8] sm:$0xf0]  ;;  %v1980_v20 = vor.u32 %v2244_v14, %v1979_v12  ;;  %v1920_v21 = vor.u32 %v2227_v15, %v1917_v16  ;;  %v1907_v22 = vld [vmem:[#allocation12 + $0x30] sm:$0xf]  ;;  %v2226_v23 = vld [vmem:[#allocation12 + $0x34] sm:$0xf0] }
  0x80   : > { %872 = vmatpush.bf16.msrb.mxu0 %v1940_v43  ;;  %636 = vmatmul.bf16.vlgmr.msra.gmra.mxu1 %v1744_v56  ;;  %v1971_v24 = vld [vmem:[#allocation12 + $0xb0] sm:$0xf]  ;;  %v1984_v25 = vor.u32 %v2243_v17, %v1981_v18  ;;  %v2242_v26 = vld [vmem:[#allocation12 + $0xb4] sm:$0xf0]  ;;  %v2225_v27 = vld [vmem:[#allocation12 + $0x34] sm:$0xf]  ;;  %v1908_v31 = vor.u32 %v2226_v23, %v1907_v22 }
  0x81   : > { %886 = vmatpush.bf16.msrb.mxu1 %v2004_v46  ;;  %650 = vmatmul.bf16.vlgmr.msra.gmra.mxu2 %v1740_v52  ;;  %v1909_v28 = vld [vmem:[#allocation12 + $0x38] sm:$0xf0]  ;;  %v2241_v29 = vld [vmem:[#allocation12 + $0xb4] sm:$0xf]  ;;  %v1972_v32 = vor.u32 %v2242_v26, %v1971_v24  ;;  %v1899_v34 = vld [vmem:[#allocation12 + $0x20] sm:$0xf] }
  0x82   : > { %900 = vmatpush.bf16.msrb.mxu2 %v1944_v47  ;;  %664 = vmatmul.bf16.vlgmr.msra.gmra.mxu3 %v1744_v56  ;;  %v1973_v30 = vld [vmem:[#allocation12 + $0xb8] sm:$0xf0]  ;;  %v1912_v33 = vor.u32 %v2225_v27, %v1909_v28  ;;  %v2224_v35 = vld [vmem:[#allocation12 + $0x24] sm:$0xf0]  ;;  %v1963_v36 = vld [vmem:[#allocation12 + $0xa0] sm:$0xf] }
  0x83   : > { %914 = vmatpush.bf16.msrb.mxu3 %v2008_v51  ;;  %v1976_v37 = vor.u32 %v2241_v29, %v1973_v30  ;;  %v2240_v38 = vld [vmem:[#allocation12 + $0xa4] sm:$0xf0]  ;;  %v2223_v39 = vld [vmem:[#allocation12 + $0x24] sm:$0xf]  ;;  %v1901_v40 = vld [vmem:[#allocation12 + $0x28] sm:$0xf0]  ;;  %v1900_v43 = vor.u32 %v2224_v35, %v1899_v34 }
  0x84   : > { %873 = vmatpush.bf16.msrb.mxu0 %v1932_v59  ;;  %v2239_v41 = vld [vmem:[#allocation12 + $0xa4] sm:$0xf]  ;;  %v1965_v42 = vld [vmem:[#allocation12 + $0xa8] sm:$0xf0]  ;;  %v1964_v44 = vor.u32 %v2240_v38, %v1963_v36  ;;  %v1904_v45 = vor.u32 %v2223_v39, %v1901_v40  ;;  %v1891_v46 = vld [vmem:[#allocation12 + $0x10] sm:$0xf] }
  0x85   : > { %887 = vmatpush.bf16.msrb.mxu1 %v1996_v60  ;;  %v2222_v47 = vld [vmem:[#allocation12 + $0x14] sm:$0xf0]  ;;  %v1955_v48 = vld [vmem:[#allocation12 + $0x90] sm:$0xf]  ;;  %v1968_v49 = vor.u32 %v2239_v41, %v1965_v42  ;;  %v2221_v51 = vld [vmem:[#allocation12 + $0x14] sm:$0xf] }
  0x86   : > { %901 = vmatpush.bf16.msrb.mxu2 %v1936_v61  ;;  %v2238_v50 = vld [vmem:[#allocation12 + $0x94] sm:$0xf0]  ;;  %v1893_v52 = vld [vmem:[#allocation12 + $0x18] sm:$0xf0]  ;;  %v2237_v53 = vld [vmem:[#allocation12 + $0x94] sm:$0xf]  ;;  %v1892_v55 = vor.u32 %v2222_v47, %v1891_v46 }
  0x87   : > { %915 = vmatpush.bf16.msrb.mxu3 %v2000_v1  ;;  %v1957_v54 = vld [vmem:[#allocation12 + $0x98] sm:$0xf0]  ;;  %v1883_v56 = vld [vmem:[#allocation12] sm:$0xf]  ;;  %v2220_v57 = vld [vmem:[#allocation12 + $0x4] sm:$0xf0]  ;;  %v1956_v59 = vor.u32 %v2238_v50, %v1955_v48  ;;  %v1896_v60 = vor.u32 %v2221_v51, %v1893_v52 }
  0x88   : > { %874 = vmatpush.bf16.msrb.mxu0 %v1924_v7  ;;  %v1947_v58 = vld [vmem:[#allocation12 + $0x80] sm:$0xf]  ;;  %v2236_v61 = vld [vmem:[#allocation12 + $0x84] sm:$0xf0]  ;;  %v2219_v62 = vld [vmem:[#allocation12 + $0x4] sm:$0xf]  ;;  %v1960_v0 = vor.u32 %v2237_v53, %v1957_v54  ;;  %v1884_v7 = vor.u32 %v2220_v57, %v1883_v56 }
  0x89   : > { %888 = vmatpush.bf16.msrb.mxu1 %v1988_v8  ;;  %v1885_v63 = vld [vmem:[#allocation12 + $0x8] sm:$0xf0]  ;;  %v2235_v1 = vld [vmem:[#allocation12 + $0x84] sm:$0xf]  ;;  %v2067_v3 = vld [vmem:[#allocation14 + $0x70] sm:$0xf]  ;;  %v1948_v11 = vor.u32 %v2236_v61, %v1947_v58 }
  0x8a   : > { %902 = vmatpush.bf16.msrb.mxu2 %v1928_v9  ;;  %v1949_v2 = vld [vmem:[#allocation12 + $0x88] sm:$0xf0]  ;;  %v2266_v4 = vld [vmem:[#allocation14 + $0x74] sm:$0xf0]  ;;  %v2131_v5 = vld [vmem:[#allocation14 + $0xf0] sm:$0xf]  ;;  %v1888_v12 = vor.u32 %v2219_v62, %v1885_v63 }
  0x8b   : > { %916 = vmatpush.bf16.msrb.mxu3 %v1992_v13  ;;  %v2282_v6 = vld [vmem:[#allocation14 + $0xf4] sm:$0xf0]  ;;  %v2265_v8 = vld [vmem:[#allocation14 + $0x74] sm:$0xf]  ;;  %v2069_v9 = vld [vmem:[#allocation14 + $0x78] sm:$0xf0]  ;;  %v1952_v16 = vor.u32 %v2235_v1, %v1949_v2  ;;  %v2068_v17 = vor.u32 %v2266_v4, %v2067_v3 }
  0x8c   : > { %875 = vmatpush.bf16.msrb.mxu0 %v1916_v19  ;;  %v2281_v10 = vld [vmem:[#allocation14 + $0xf4] sm:$0xf]  ;;  %v2133_v13 = vld [vmem:[#allocation14 + $0xf8] sm:$0xf0]  ;;  %v1875_v14 = vld [vmem:[%s2899_s19] sm:$0xf] }
  0x8d   : > { %889 = vmatpush.bf16.msrb.mxu1 %v1980_v20  ;;  %v2186_v15 = vld [vmem:[%s2899_s19 + $0x4] sm:$0xf0]  ;;  %v2185_v18 = vld [vmem:[%s2899_s19 + $0x4] sm:$0xf]  ;;  %v1877_v19 = vld [vmem:[%s2899_s19 + $0x8] sm:$0xf0]  ;;  %v2132_v20 = vor.u32 %v2282_v6, %v2131_v5 }
  0x8e   : > { %903 = vmatpush.bf16.msrb.mxu2 %v1920_v21  ;;  %v2072_v21 = vor.u32 %v2265_v8, %v2069_v9  ;;  %v2059_v22 = vld [vmem:[#allocation14 + $0x60] sm:$0xf]  ;;  %v2264_v23 = vld [vmem:[#allocation14 + $0x64] sm:$0xf0]  ;;  %v2926_v26 = vor.u32 %v2186_v15, %v1875_v14  ;;  %v2263_v28 = vld [vmem:[#allocation14 + $0x64] sm:$0xf]  ;;  %v2928_v30 = vor.u32 %v2185_v18, %v1877_v19 }
  0x8f   : > { %917 = vmatpush.bf16.msrb.mxu3 %v1984_v25  ;;  %v2123_v24 = vld [vmem:[#allocation14 + $0xe0] sm:$0xf]  ;;  %v2136_v25 = vor.u32 %v2281_v10, %v2133_v13  ;;  %v2280_v27 = vld [vmem:[#allocation14 + $0xe4] sm:$0xf0]  ;;  %v2061_v29 = vld [vmem:[#allocation14 + $0x68] sm:$0xf0] }
  0x90   : > { %876 = vmatpush.bf16.msrb.mxu0 %v1908_v31  ;;  %v2279_v31 = vld [vmem:[#allocation14 + $0xe4] sm:$0xf]  ;;  %v2124_v34 = vor.u32 %v2280_v27, %v2123_v24  ;;  %v2064_v35 = vor.u32 %v2263_v28, %v2061_v29  ;;  %v2051_v36 = vld [vmem:[#allocation14 + $0x50] sm:$0xf]  ;;  %v2278_v40 = vld [vmem:[#allocation14 + $0xd4] sm:$0xf0] }
  0x91   : > { %890 = vmatpush.bf16.msrb.mxu1 %v1972_v32  ;;  %v2125_v32 = vld [vmem:[#allocation14 + $0xe8] sm:$0xf0]  ;;  %v2115_v38 = vld [vmem:[#allocation14 + $0xd0] sm:$0xf]  ;;  %v2261_v41 = vld [vmem:[#allocation14 + $0x54] sm:$0xf] }
  0x92   : > { %904 = vmatpush.bf16.msrb.mxu2 %v1912_v33  ;;  %v2060_v33 = vor.u32 %v2264_v23, %v2059_v22  ;;  %v2128_v39 = vor.u32 %v2279_v31, %v2125_v32  ;;  %v2053_v42 = vld [vmem:[#allocation14 + $0x58] sm:$0xf0]  ;;  %v2116_v46 = vor.u32 %v2278_v40, %v2115_v38  ;;  %v2043_v48 = vld [vmem:[#allocation14 + $0x40] sm:$0xf]  ;;  %v2276_v52 = vld [vmem:[#allocation14 + $0xc4] sm:$0xf0] }
  0x93   : > { %918 = vmatpush.bf16.msrb.mxu3 %v1976_v37  ;;  %v2262_v37 = vld [vmem:[#allocation14 + $0x54] sm:$0xf0]  ;;  %v2056_v47 = vor.u32 %v2261_v41, %v2053_v42  ;;  %v2107_v50 = vld [vmem:[#allocation14 + $0xc0] sm:$0xf]  ;;  %v2259_v53 = vld [vmem:[#allocation14 + $0x44] sm:$0xf] }
  0x94   : > { %877 = vmatpush.bf16.msrb.mxu0 %v1900_v43  ;;  %v2277_v43 = vld [vmem:[#allocation14 + $0xd4] sm:$0xf]  ;;  %v2045_v54 = vld [vmem:[#allocation14 + $0x48] sm:$0xf0]  ;;  %v2108_v58 = vor.u32 %v2276_v52, %v2107_v50  ;;  %v2258_v61 = vld [vmem:[#allocation14 + $0x34] sm:$0xf0] }
  0x95   : > { %891 = vmatpush.bf16.msrb.mxu1 %v1964_v44  ;;  %v2117_v44 = vld [vmem:[#allocation14 + $0xd8] sm:$0xf0]  ;;  %v2109_v56 = vld [vmem:[#allocation14 + $0xc8] sm:$0xf0]  ;;  %v2099_v62 = vld [vmem:[#allocation14 + $0xb0] sm:$0xf] }
  0x96   : > { %905 = vmatpush.bf16.msrb.mxu2 %v1904_v45  ;;  %v2052_v45 = vor.u32 %v2262_v37, %v2051_v36  ;;  %v2120_v51 = vor.u32 %v2277_v43, %v2117_v44  ;;  %v2257_v1 = vld [vmem:[#allocation14 + $0x34] sm:$0xf]  ;;  %v2037_v2 = vld [vmem:[#allocation14 + $0x38] sm:$0xf0]  ;;  %v2027_v8 = vld [vmem:[#allocation14 + $0x20] sm:$0xf] }
  0x97   : > { %919 = vmatpush.bf16.msrb.mxu3 %v1968_v49  ;;  %v2260_v49 = vld [vmem:[#allocation14 + $0x44] sm:$0xf0]  ;;  %v2273_v3 = vld [vmem:[#allocation14 + $0xb4] sm:$0xf]  ;;  %v2101_v4 = vld [vmem:[#allocation14 + $0xb8] sm:$0xf0] }
  0x98   : > { %878 = vmatpush.bf16.msrb.mxu0 %v1892_v55  ;;  %v2275_v55 = vld [vmem:[#allocation14 + $0xc4] sm:$0xf]  ;;  %v2044_v57 = vor.u32 %v2260_v49, %v2043_v48  ;;  %v2256_v9 = vld [vmem:[#allocation14 + $0x24] sm:$0xf0]  ;;  %v2091_v10 = vld [vmem:[#allocation14 + $0xa0] sm:$0xf] }
  0x99   : > { %892 = vmatpush.bf16.msrb.mxu1 %v1956_v59  ;;  %v2048_v59 = vor.u32 %v2259_v53, %v2045_v54  ;;  %v2112_v63 = vor.u32 %v2275_v55, %v2109_v56  ;;  %v2255_v13 = vld [vmem:[#allocation14 + $0x24] sm:$0xf]  ;;  %v2029_v14 = vld [vmem:[#allocation14 + $0x28] sm:$0xf0]  ;;  %v2083_v22 = vld [vmem:[#allocation14 + $0x90] sm:$0xf] }
  0x9a   : > { %906 = vmatpush.bf16.msrb.mxu2 %v1896_v60  ;;  %v2035_v60 = vld [vmem:[#allocation14 + $0x30] sm:$0xf]  ;;  %v2271_v15 = vld [vmem:[#allocation14 + $0xa4] sm:$0xf]  ;;  %v2032_v19 = vor.u32 %v2255_v13, %v2029_v14  ;;  %v2270_v24 = vld [vmem:[#allocation14 + $0x94] sm:$0xf0] }
  0x9b   : > { %920 = vmatpush.bf16.msrb.mxu3 %v1960_v0  ;;  %v2274_v0 = vld [vmem:[#allocation14 + $0xb4] sm:$0xf0]  ;;  %v2036_v5 = vor.u32 %v2258_v61, %v2035_v60  ;;  %v2021_v27 = vld [vmem:[#allocation14 + $0x18] sm:$0xf0]  ;;  %v2269_v28 = vld [vmem:[#allocation14 + $0x94] sm:$0xf]  ;;  %v2084_v32 = vor.u32 %v2270_v24, %v2083_v22 }
  0x9c   : > { %879 = vmatpush.bf16.msrb.mxu0 %v1884_v7  ;;  %v2100_v6 = vor.u32 %v2274_v0, %v2099_v62  ;;  %v2040_v7 = vor.u32 %v2257_v1, %v2037_v2  ;;  %v2085_v29 = vld [vmem:[#allocation14 + $0x98] sm:$0xf0]  ;;  %v2075_v36 = vld [vmem:[#allocation14 + $0x80] sm:$0xf]  ;;  %v2268_v38 = vld [vmem:[#allocation14 + $0x84] sm:$0xf0] }
  0x9d   : > { %893 = vmatpush.bf16.msrb.mxu1 %v1948_v11  ;;  %v2104_v11 = vor.u32 %v2273_v3, %v2101_v4  ;;  %v2088_v37 = vor.u32 %v2269_v28, %v2085_v29  ;;  %v2013_v40 = vld [vmem:[#allocation14 + $0x8] sm:$0xf0]  ;;  %v2267_v41 = vld [vmem:[#allocation14 + $0x84] sm:$0xf]  ;;  %v2076_v44 = vor.u32 %v2268_v38, %v2075_v36  ;;  %s3006_s11 = scalar_lea.vmem [#allocation17], %s1736_s30  ;;  %s3008_s14 = smov 0  }
  0x9e   : > { %907 = vmatpush.bf16.msrb.mxu2 %v1888_v12  ;;  %v2272_v12 = vld [vmem:[#allocation14 + $0xa4] sm:$0xf0]  ;;  %v2077_v42 = vld [vmem:[#allocation14 + $0x88] sm:$0xf0] }
  0x9f   : > { %921 = vmatpush.bf16.msrb.mxu3 %v1952_v16  ;;  %880 = vmatmul.bf16.vlgmr.msrb.gmra.mxu0 %v2926_v26  ;;  %v2093_v16 = vld [vmem:[#allocation14 + $0xa8] sm:$0xf0]  ;;  %v2092_v18 = vor.u32 %v2272_v12, %v2091_v10 }
  0xa0   : > { %1120 = vmatpush.bf16.msra.mxu0 %v2068_v17  ;;  %894 = vmatmul.bf16.vlgmr.msrb.gmra.mxu1 %v2928_v30  ;;  %v2028_v17 = vor.u32 %v2256_v9, %v2027_v8  ;;  %v2096_v23 = vor.u32 %v2271_v15, %v2093_v16 }
  0xa1   : > { %1134 = vmatpush.bf16.msra.mxu1 %v2132_v20  ;;  %908 = vmatmul.bf16.vlgmr.msrb.gmra.mxu2 %v2926_v26  ;;  %v2019_v20 = vld [vmem:[#allocation14 + $0x10] sm:$0xf] }
  0xa2   : > { %1148 = vmatpush.bf16.msra.mxu2 %v2072_v21  ;;  %922 = vmatmul.bf16.vlgmr.msrb.gmra.mxu3 %v2928_v30  ;;  %v2254_v21 = vld [vmem:[#allocation14 + $0x14] sm:$0xf0] }
  0xa3   : > { %1162 = vmatpush.bf16.msra.mxu3 %v2136_v25  ;;  %v2253_v25 = vld [vmem:[#allocation14 + $0x14] sm:$0xf]  ;;  %v2020_v31 = vor.u32 %v2254_v21, %v2019_v20 }
  0xa4   : > { %1121 = vmatpush.bf16.msra.mxu0 %v2060_v33  ;;  %v2024_v33 = vor.u32 %v2253_v25, %v2021_v27 }
  0xa5   : > { %1135 = vmatpush.bf16.msra.mxu1 %v2124_v34  ;;  %v2011_v34 = vld [vmem:[#allocation14] sm:$0xf] }
  0xa6   : > { %1149 = vmatpush.bf16.msra.mxu2 %v2064_v35  ;;  %v2252_v35 = vld [vmem:[#allocation14 + $0x4] sm:$0xf0] }
  0xa7   : > { %1163 = vmatpush.bf16.msra.mxu3 %v2128_v39  ;;  %v2251_v39 = vld [vmem:[#allocation14 + $0x4] sm:$0xf]  ;;  %v2012_v43 = vor.u32 %v2252_v35, %v2011_v34 }
  0xa8   : > { %1122 = vmatpush.bf16.msra.mxu0 %v2052_v45  ;;  %v2016_v45 = vor.u32 %v2251_v39, %v2013_v40 }
  0xa9   : > { %1136 = vmatpush.bf16.msra.mxu1 %v2116_v46  ;;  %v2080_v46 = vor.u32 %v2267_v41, %v2077_v42 }
  0xaa   : > { %1150 = vmatpush.bf16.msra.mxu2 %v2056_v47 }
  0xab   : > { %1164 = vmatpush.bf16.msra.mxu3 %v2120_v51 }
  0xac   : > { %1123 = vmatpush.bf16.msra.mxu0 %v2044_v57 }
  0xad   : > { %1137 = vmatpush.bf16.msra.mxu1 %v2108_v58 }
  0xae   : > { %1151 = vmatpush.bf16.msra.mxu2 %v2048_v59 }
  0xaf   : > { %1165 = vmatpush.bf16.msra.mxu3 %v2112_v63 }
  0xb0   : > { %1124 = vmatpush.bf16.msra.mxu0 %v2036_v5 }
  0xb1   : > { %1138 = vmatpush.bf16.msra.mxu1 %v2100_v6 }
  0xb2   : > { %1152 = vmatpush.bf16.msra.mxu2 %v2040_v7 }
  0xb3   : > { %1166 = vmatpush.bf16.msra.mxu3 %v2104_v11 }
  0xb4   : > { %1125 = vmatpush.bf16.msra.mxu0 %v2028_v17 }
  0xb5   : > { %1139 = vmatpush.bf16.msra.mxu1 %v2092_v18 }
  0xb6   : > { %1153 = vmatpush.bf16.msra.mxu2 %v2032_v19 }
  0xb7   : > { %1167 = vmatpush.bf16.msra.mxu3 %v2096_v23 }
  0xb8   : > { %1126 = vmatpush.bf16.msra.mxu0 %v2020_v31 }
  0xb9   : > { %1140 = vmatpush.bf16.msra.mxu1 %v2084_v32 }
  0xba   : > { %1154 = vmatpush.bf16.msra.mxu2 %v2024_v33 }
  0xbb   : > { %1168 = vmatpush.bf16.msra.mxu3 %v2088_v37 }
  0xbc   : > { %1127 = vmatpush.bf16.msra.mxu0 %v2012_v43 }
  0xbd   : > { %1141 = vmatpush.bf16.msra.mxu1 %v2076_v44 }
  0xbe   : > { %1155 = vmatpush.bf16.msra.mxu2 %v2016_v45 }
  0xbf   : > { %1169 = vmatpush.bf16.msra.mxu3 %v2080_v46  ;;  %1128 = vmatmul.bf16.vlgmr.msra.gmra.mxu0 %v2926_v26 }
  0xc0   : > { %1142 = vmatmul.bf16.vlgmr.msra.gmra.mxu1 %v2928_v30 }
  0xc1   : > { %1156 = vmatmul.bf16.vlgmr.msra.gmra.mxu2 %v2926_v26 }
  0xc2   : > { %1170 = vmatmul.bf16.vlgmr.msra.gmra.mxu3 %v2928_v30 }
  0xfc   : > { %v623_v47 = vpop.f32.mrf.mxu0 }
  0xfd   : > { %v637_v48 = vpop.f32.mrf.mxu1 }
  0xfe   : > { %v638_v49 = vadd.f32 %v637_v48, %v623_v47 }
 0x104   : > { %v651_v50 = vpop.f32.mrf.mxu2  ;;  %v625_v54 = vpop.f32.mrf.mxu0 }
 0x105   : > { %v665_v51 = vpop.f32.mrf.mxu3  ;;  %v639_v55 = vpop.f32.mrf.mxu1 }
 0x106   : > { %v666_v52 = vadd.f32 %v665_v51, %v651_v50  ;;  %v640_v26 = vadd.f32 %v639_v55, %v625_v54 }
 0x108   : > { %v1176_v53 = vpack.c.bf16 %v666_v52, %v638_v49 }
 0x10a   : > { %1183 = vst.msk [vmem:[#allocation2] sm:$0xf] %vm1182_vm0, %v1176_v53  ;;  %v1276_v56 = vrot.slane %v1176_v53, 4  ;;  %1191 = vrot.lane.b32.xlu0 %v1176_v53, %s2690_s23 }
 0x10c   : > { %1281 = vst.msk [vmem:[#allocation2 + $0x20] sm:$0xf] %vm1182_vm0, %v1276_v56  ;;  %v653_v30 = vpop.f32.mrf.mxu2 }
 0x10d   : > { %v667_v57 = vpop.f32.mrf.mxu3 }
 0x10e   : > { %v668_v58 = vadd.f32 %v667_v57, %v653_v30 }
 0x110   : > { %v1177_v59 = vpack.c.bf16 %v668_v58, %v640_v26 }
 0x112   : > { %1184 = vst.msk [vmem:[#allocation2 + $0x4] sm:$0xf] %vm1182_vm0, %v1177_v59  ;;  %v1277_v60 = vrot.slane %v1177_v59, 4  ;;  %1222 = vrot.lane.b32.xlu0 %v1176_v53, %s2691_s2  ;;  %1224 = vrot.lane.b32.xlu1 %v1177_v59, %s2691_s2 }
 0x114   : > { %1282 = vst.msk [vmem:[#allocation2 + $0x24] sm:$0xf] %vm1182_vm0, %v1277_v60 }
 0x11a   : > { %1249 = vrot.lane.b32.xlu0 %v1176_v53, %s2692_s15  ;;  %1251 = vrot.lane.b32.xlu1 %v1177_v59, %s2692_s15 }
 0x11c   : > { %v881_v61 = vpop.f32.mrf.mxu0 }
 0x11d   : > { %v895_v62 = vpop.f32.mrf.mxu1 }
 0x11e   : > { %v896_v63 = vadd.f32 %v895_v62, %v881_v61 }
 0x122   : > { %1193 = vrot.lane.b32.xlu0 %v1177_v59, %s2690_s23 }
 0x124   : > { %v909_v0 = vpop.f32.mrf.mxu2  ;;  %v883_v4 = vpop.f32.mrf.mxu0 }
 0x125   : > { %v923_v1 = vpop.f32.mrf.mxu3  ;;  %v897_v5 = vpop.f32.mrf.mxu1 }
 0x126   : > { %v924_v2 = vadd.f32 %v923_v1, %v909_v0  ;;  %v898_v7 = vadd.f32 %v897_v5, %v883_v4 }
 0x128   : > { %v1178_v3 = vpack.c.bf16 %v924_v2, %v896_v63 }
 0x12a   : > { %1185 = vst.msk [vmem:[#allocation3] sm:$0xf] %vm1182_vm0, %v1178_v3  ;;  %v1283_v6 = vrot.slane %v1178_v3, 4  ;;  %1231 = vrot.lane.b32.xlu2 %v1178_v3, %s2691_s2  ;;  %1202 = vrot.lane.b32.xlu1 %v1178_v3, %s2690_s23 }
 0x12c   : > { %1288 = vst.msk [vmem:[#allocation3 + $0x20] sm:$0xf] %vm1182_vm0, %v1283_v6  ;;  %v911_v8 = vpop.f32.mrf.mxu2 }
 0x12d   : > { %v925_v9 = vpop.f32.mrf.mxu3 }
 0x12e   : > { %v926_v10 = vadd.f32 %v925_v9, %v911_v8 }
 0x130   : > { %v1179_v11 = vpack.c.bf16 %v926_v10, %v898_v7 }
 0x132   : > { %1186 = vst.msk [vmem:[#allocation3 + $0x4] sm:$0xf] %vm1182_vm0, %v1179_v11  ;;  %v1284_v12 = vrot.slane %v1179_v11, 4  ;;  %1233 = vrot.lane.b32.xlu0 %v1179_v11, %s2691_s2  ;;  %1258 = vrot.lane.b32.xlu2 %v1178_v3, %s2692_s15 }
 0x133   : > { %1204 = vrot.lane.b32.xlu1 %v1179_v11, %s2690_s23 }
 0x134   : > { %1289 = vst.msk [vmem:[#allocation3 + $0x24] sm:$0xf] %vm1182_vm0, %v1284_v12 }
 0x13a   : > { %1260 = vrot.lane.b32.xlu0 %v1179_v11, %s2692_s15 }
 0x13c   : > { %v1129_v13 = vpop.f32.mrf.mxu0 }
 0x13d   : > { %v1143_v14 = vpop.f32.mrf.mxu1 }
 0x13e   : > { %v1144_v15 = vadd.f32 %v1143_v14, %v1129_v13 }
 0x144   : > { %v1157_v16 = vpop.f32.mrf.mxu2  ;;  %v1131_v21 = vpop.f32.mrf.mxu0 }
 0x145   : > { %v1171_v17 = vpop.f32.mrf.mxu3  ;;  %v1145_v22 = vpop.f32.mrf.mxu1 }
 0x146   : > { %v1172_v18 = vadd.f32 %v1171_v17, %v1157_v16  ;;  %v1146_v25 = vadd.f32 %v1145_v22, %v1131_v21 }
 0x148   : > { %v1180_v19 = vpack.c.bf16 %v1172_v18, %v1144_v15 }
 0x14a   : > { %1187 = vst.msk [vmem:[#allocation4] sm:$0xf] %vm1182_vm0, %v1180_v19  ;;  %v1290_v20 = vrot.slane %v1180_v19, 4  ;;  %1213 = vrot.lane.b32.xlu2 %v1180_v19, %s2690_s23  ;;  %1240 = vrot.lane.b32.xlu1 %v1180_v19, %s2691_s2 }
 0x14c   : > { %1295 = vst.msk [vmem:[#allocation4 + $0x20] sm:$0xf] %vm1182_vm0, %v1290_v20  ;;  %v1159_v23 = vpop.f32.mrf.mxu2 }
 0x14d   : > { %v1173_v24 = vpop.f32.mrf.mxu3 }
 0x14e   : > { %v1174_v27 = vadd.f32 %v1173_v24, %v1159_v23 }
 0x150   : > { %v1181_v28 = vpack.c.bf16 %v1174_v27, %v1146_v25 }
 0x152   : > { %1188 = vst.msk [vmem:[#allocation4 + $0x4] sm:$0xf] %vm1182_vm0, %v1181_v28  ;;  %v1291_v29 = vrot.slane %v1181_v28, 4  ;;  %1215 = vrot.lane.b32.xlu2 %v1181_v28, %s2690_s23  ;;  %1267 = vrot.lane.b32.xlu1 %v1180_v19, %s2692_s15 }
 0x154   : > { %1296 = vst.msk [vmem:[#allocation4 + $0x24] sm:$0xf] %vm1182_vm0, %v1291_v29 }
 0x15a   : > { %1242 = vrot.lane.b32.xlu2 %v1181_v28, %s2691_s2 }
 0x162   : > { %1269 = vrot.lane.b32.xlu2 %v1181_v28, %s2692_s15 }
 0x17c   : > { %v1192_v31 = vpop.permute.xlu0 %1191 }
 0x17d   : > { %1198 = vst.msk [vmem:[#allocation2 + $0x8] sm:$0xf] %vm1182_vm0, %v1192_v31  ;;  %v1297_v32 = vrot.slane %v1192_v31, 4 }
 0x17f   : > { %1302 = vst.msk [vmem:[#allocation2 + $0x28] sm:$0xf] %vm1182_vm0, %v1297_v32 }
 0x184   : > { %v1232_v33 = vpop.permute.xlu2 %1231  ;;  %v1223_v35 = vpop.permute.xlu0 %1222 }
 0x185   : > { %1238 = vst.msk [vmem:[#allocation3 + $0x10] sm:$0xf] %vm1182_vm0, %v1232_v33  ;;  %v1325_v34 = vrot.slane %v1232_v33, 4  ;;  %v1225_v36 = vpop.permute.xlu1 %1224  ;;  %v1318_v37 = vrot.slane %v1223_v35, 4 }
 0x186   : > { %1229 = vst.msk [vmem:[#allocation2 + $0x10] sm:$0xf] %vm1182_vm0, %v1223_v35  ;;  %v1319_v38 = vrot.slane %v1225_v36, 4 }
 0x187   : > { %1330 = vst.msk [vmem:[#allocation3 + $0x30] sm:$0xf] %vm1182_vm0, %v1325_v34 }
 0x188   : > { %1323 = vst.msk [vmem:[#allocation2 + $0x30] sm:$0xf] %vm1182_vm0, %v1318_v37 }
 0x189   : > { %1230 = vst.msk [vmem:[#allocation2 + $0x14] sm:$0xf] %vm1182_vm0, %v1225_v36 }
 0x18a   : > { %1324 = vst.msk [vmem:[#allocation2 + $0x34] sm:$0xf] %vm1182_vm0, %v1319_v38 }
 0x18c   : > { %v1259_v39 = vpop.permute.xlu2 %1258  ;;  %v1250_v41 = vpop.permute.xlu0 %1249 }
 0x18d   : > { %1265 = vst.msk [vmem:[#allocation3 + $0x18] sm:$0xf] %vm1182_vm0, %v1259_v39  ;;  %v1346_v40 = vrot.slane %v1259_v39, 4  ;;  %v1252_v42 = vpop.permute.xlu1 %1251  ;;  %v1339_v43 = vrot.slane %v1250_v41, 4 }
 0x18e   : > { %1256 = vst.msk [vmem:[#allocation2 + $0x18] sm:$0xf] %vm1182_vm0, %v1250_v41  ;;  %v1340_v44 = vrot.slane %v1252_v42, 4 }
 0x18f   : > { %1351 = vst.msk [vmem:[#allocation3 + $0x38] sm:$0xf] %vm1182_vm0, %v1346_v40 }
 0x190   : > { %1344 = vst.msk [vmem:[#allocation2 + $0x38] sm:$0xf] %vm1182_vm0, %v1339_v43 }
 0x191   : > { %1257 = vst.msk [vmem:[#allocation2 + $0x1c] sm:$0xf] %vm1182_vm0, %v1252_v42 }
 0x192   : > { %1345 = vst.msk [vmem:[#allocation2 + $0x3c] sm:$0xf] %vm1182_vm0, %v1340_v44 }
 0x194   : > { %v1194_v45 = vpop.permute.xlu0 %1193 }
 0x195   : > { %1199 = vst.msk [vmem:[#allocation2 + $0xc] sm:$0xf] %vm1182_vm0, %v1194_v45  ;;  %v1298_v46 = vrot.slane %v1194_v45, 4 }
 0x197   : > { %1303 = vst.msk [vmem:[#allocation2 + $0x2c] sm:$0xf] %vm1182_vm0, %v1298_v46 }
 0x19c   : > { %v1203_v47 = vpop.permute.xlu1 %1202 }
 0x19d   : > { %1209 = vst.msk [vmem:[#allocation3 + $0x8] sm:$0xf] %vm1182_vm0, %v1203_v47  ;;  %v1304_v48 = vrot.slane %v1203_v47, 4 }
 0x19f   : > { %1309 = vst.msk [vmem:[#allocation3 + $0x28] sm:$0xf] %vm1182_vm0, %v1304_v48 }
 0x1a4   : > { %v1214_v49 = vpop.permute.xlu2 %1213  ;;  %v1234_v51 = vpop.permute.xlu0 %1233 }
 0x1a5   : > { %1220 = vst.msk [vmem:[#allocation4 + $0x8] sm:$0xf] %vm1182_vm0, %v1214_v49  ;;  %v1311_v50 = vrot.slane %v1214_v49, 4  ;;  %v1326_v52 = vrot.slane %v1234_v51, 4  ;;  %v1205_v53 = vpop.permute.xlu1 %1204 }
 0x1a6   : > { %1239 = vst.msk [vmem:[#allocation3 + $0x14] sm:$0xf] %vm1182_vm0, %v1234_v51  ;;  %v1305_v54 = vrot.slane %v1205_v53, 4 }
 0x1a7   : > { %1316 = vst.msk [vmem:[#allocation4 + $0x28] sm:$0xf] %vm1182_vm0, %v1311_v50 }
 0x1a8   : > { %1331 = vst.msk [vmem:[#allocation3 + $0x34] sm:$0xf] %vm1182_vm0, %v1326_v52 }
 0x1a9   : > { %1210 = vst.msk [vmem:[#allocation3 + $0xc] sm:$0xf] %vm1182_vm0, %v1205_v53 }
 0x1aa   : > { %1310 = vst.msk [vmem:[#allocation3 + $0x2c] sm:$0xf] %vm1182_vm0, %v1305_v54 }
 0x1ac   : > { %v1216_v55 = vpop.permute.xlu2 %1215  ;;  %v1261_v26 = vpop.permute.xlu0 %1260 }
 0x1ad   : > { %1221 = vst.msk [vmem:[#allocation4 + $0xc] sm:$0xf] %vm1182_vm0, %v1216_v55  ;;  %v1312_v56 = vrot.slane %v1216_v55, 4  ;;  %v1347_v30 = vrot.slane %v1261_v26, 4 }
 0x1ae   : > { %1266 = vst.msk [vmem:[#allocation3 + $0x1c] sm:$0xf] %vm1182_vm0, %v1261_v26 }
 0x1af   : > { %1317 = vst.msk [vmem:[#allocation4 + $0x2c] sm:$0xf] %vm1182_vm0, %v1312_v56 }
 0x1b0   : > { %1352 = vst.msk [vmem:[#allocation3 + $0x3c] sm:$0xf] %vm1182_vm0, %v1347_v30 }
 0x1b4   : > { %v1243_v57 = vpop.permute.xlu2 %1242 }
 0x1b5   : > { %1248 = vst.msk [vmem:[#allocation4 + $0x14] sm:$0xf] %vm1182_vm0, %v1243_v57  ;;  %v1333_v58 = vrot.slane %v1243_v57, 4 }
 0x1b7   : > { %1338 = vst.msk [vmem:[#allocation4 + $0x34] sm:$0xf] %vm1182_vm0, %v1333_v58 }
 0x1bc   : > { %v1270_v59 = vpop.permute.xlu2 %1269  ;;  %v1241_v60 = vpop.permute.xlu1 %1240 }
 0x1bd   : > { %1275 = vst.msk [vmem:[#allocation4 + $0x1c] sm:$0xf] %vm1182_vm0, %v1270_v59  ;;  %v1354_v61 = vrot.slane %v1270_v59, 4  ;;  %v1332_v62 = vrot.slane %v1241_v60, 4 }
 0x1be   : > { %1247 = vst.msk [vmem:[#allocation4 + $0x10] sm:$0xf] %vm1182_vm0, %v1241_v60 }
 0x1bf   : > { %1359 = vst.msk [vmem:[#allocation4 + $0x3c] sm:$0xf] %vm1182_vm0, %v1354_v61 }
 0x1c0   : > { %1337 = vst.msk [vmem:[#allocation4 + $0x30] sm:$0xf] %vm1182_vm0, %v1332_v62 }
 0x1c4   : > { %v1268_v63 = vpop.permute.xlu1 %1267 }
 0x1c5   : > { %1274 = vst.msk [vmem:[#allocation4 + $0x18] sm:$0xf] %vm1182_vm0, %v1268_v63  ;;  %v1353_v0 = vrot.slane %v1268_v63, 4 }
 0x1c7   : > { %1358 = vst.msk [vmem:[#allocation4 + $0x38] sm:$0xf] %vm1182_vm0, %v1353_v0 }
 0x1c8 LB: >> { %s2283_s16 = sshll.u32 %s2681_s14, 3  ;;  %vm1393_vm1 = vcmask 261120   ;;  %vm1414_vm2 = vcmask 130048   ;;  %s2155_s17 = sshll.u32 %s2681_s14, 5  ;;  %v1471_v43 = vld [vmem:[#allocation5 + $0x10] sm:$0xff]  ;;  %v1472_v44 = vld [vmem:[#allocation5] sm:$0xff]  ;;  %s2681_s14 = sphi %s3008_s14, %s1369_s14  }
 0x1c9   : >> { %s1376_s20 = scalar_lea.vmem [#allocation3], %s2283_s16  ;;  %s1372_s5 = scalar_lea.vmem [#allocation2], %s2283_s16  ;;  %v1473_v49 = vld [vmem:[#allocation5 + $0x18] sm:$0xff]  ;;  %v1474_v50 = vld [vmem:[#allocation5 + $0x8] sm:$0xff] }
 0x1ca   : >> { %v2286_v1 = vld [vmem:[%s1376_s20] sm:$0xff]  ;;  %s1380_s13 = scalar_lea.vmem [#allocation4], %s2283_s16  ;;  %s1466_s22 = scalar_lea.vmem [#allocation15], %s2155_s17 }
 0x1cb   : >> { %v1398_v2 = vsel %vm1393_vm1, %v2286_v1, 0  ;;  %v2284_v3 = vld [vmem:[%s1372_s5] sm:$0xff]  ;;  %v2168_v20 = vld [vmem:[%s1466_s22 + $0x10] sm:$0xf]  ;;  %v2293_v21 = vld [vmem:[%s1466_s22 + $0x14] sm:$0xf0] }
 0x1cc   : >> { %1407 = vmatpush.bf16.xpose.msra.mxu0 %v1398_v2  ;;  %v2292_v22 = vld [vmem:[%s1466_s22 + $0x14] sm:$0xf]  ;;  %v2169_v23 = vor.u32 %v2293_v21, %v2168_v20  ;;  %v2170_v24 = vld [vmem:[%s1466_s22 + $0x18] sm:$0xf0]  ;;  %v2160_v27 = vld [vmem:[%s1466_s22] sm:$0xf] }
 0x1cd   : >> { %v2173_v25 = vor.u32 %v2292_v22, %v2170_v24  ;;  %v2291_v28 = vld [vmem:[%s1466_s22 + $0x4] sm:$0xf0]  ;;  %v2290_v29 = vld [vmem:[%s1466_s22 + $0x4] sm:$0xf]  ;;  %v2162_v32 = vld [vmem:[%s1466_s22 + $0x8] sm:$0xf0] }
 0x1ce   : >> { %v2288_v8 = vld [vmem:[%s1380_s13] sm:$0xff]  ;;  %1505 = vmatpush.bf16.msra.mxu2 %v2169_v23  ;;  %v2161_v31 = vor.u32 %v2291_v28, %v2160_v27  ;;  %v2165_v33 = vor.u32 %v2290_v29, %v2162_v32  ;;  %s1369_s14 = sadd.s32 1, %s2681_s14  }
 0x1cf   : >> { %1450 = vmatpush.bf16.msra.mxu1 %v2288_v8  ;;  %1519 = vmatpush.bf16.msra.mxu3 %v2173_v25  ;;  %p1366_p1 = scmp.ge.s32.totalorder %s1369_s14, 8  }
 0x1d0   : > { %v1539_v56 = vld [vmem:[%s3073_s6] sm:$0x3] (%p1366_p1)  ;;  %s2294_s0 = sshll.u32 (%p1366_p1), %s2756_s28, 5  ;;  %s1566_s19 = sshll.u32 (%p1366_p1), %s3006_s11, 4  ;;  %s1567_s19 = int_to_ptr.vmem [resolvable:$true] %s1566_s19 }
 0x1d1   : > { %v1541_v30 = vperm.slane (%p1366_p1), %v1539_v56, 0  ;;  %v1542_v57 = vperm.slane (%p1366_p1), %v1539_v56, 1  ;;  %s1565_s12 = scalar_lea.hbm (%p1366_p1), %s3074_s7, %s2294_s0  ;;  %s1554_s28 = scalar_lea.sflag (%p1366_p1), [#allocation8], %s2888_s10 }
 0x1d2   : >> { %1506 = vmatpush.bf16.msra.mxu2 %v2161_v31  ;;  %s1568_s30 = sshll.u32 (%p1366_p1), %s1565_s12, 4  ;;  %s2611_s16 = scalar_lea.hbm (%p1366_p1), %s3074_s7, 128  ;;  %s1569_s30 = int_to_ptr.hbm [resolvable:$true] %s1568_s30 }
 0x1d3   : >> { %2149 = vmatmul.msk.bf16.vlgmr.msra.gmra.mxu0 %vm1393_vm1, %v2284_v3  ;;  %1520 = vmatpush.bf16.msra.mxu3 %v2165_v33  ;;  %s2605_s23 = sshra.s32 (%p1366_p1), %s1569_s30, 4  ;;  %s2606_s23 = int_to_ptr.hbm [resolvable:$true] %s2605_s23 }
 0x1d4   : > { %s2607_s2 = scalar_lea.hbm (%p1366_p1), %s2606_s23, 32  ;;  %p2612_p9 = scmp.lt.s32.totalorder (%p1366_p1), %s2606_s23, %s3074_s7 }
 0x1d5   : > { %p2608_p4 = scmp.ne.s32.totalorder (%p1366_p1), %s2606_s23, %s2607_s2  ;;  %p2613_p7 = scmp.lt.s32.totalorder (%p1366_p1), %s2611_s16, %s2607_s2 }
 0x1d7   : > { %p2609_p8 = pnand (%p1366_p1), %p2608_p4, %p2830_p0  ;;  %p2614_p10 = por (%p1366_p1), %p2613_p7, %p2612_p9 }
 0x1d9   : > { %p2610_p2 = pneg (%p1366_p1), %p2609_p8 }
 0x1db   : > { %p2615_p11 = pnand (%p1366_p1), %p2614_p10, %p2610_p2 }
 0x250   : >> { %v1409_v4 = vpop.f32.mrf.mxu0 }
 0x251   : >> { %v1415_v5 = vsel %vm1414_vm2, %v1409_v4, -inf }
 0x252   : >> { %1416 = vmax.xlane.f32.xlu0 %v1415_v5 }
 0x258   : >> { %v1411_v6 = vpop.f32.mrf.mxu0 }
 0x259   : >> { %v1418_v7 = vsel %vm1414_vm2, %v1411_v6, -inf }
 0x25a   : >> { %1419 = vmax.xlane.f32.xlu0 %v1418_v7 }
 0x2c5   : >> { %v1417_v9 = vpop.xlane.xlu0 %1416 }
 0x2c6   : >> { %v1421_v10 = vsub.f32 %v1409_v4, %v1417_v9 }
 0x2c8   : >> { %v1423_v11 = vmul.f32 1.442695, %v1421_v10 }
 0x2ca   : >> { %2403 = vpow2.f32 %v1423_v11 }
 0x2cd   : >> { %v1420_v12 = vpop.xlane.xlu0 %1419 }
 0x2ce   : >> { %v1422_v13 = vsub.f32 %v1411_v6, %v1420_v12 }
 0x2d0   : >> { %v2404_v14 = vpop.eup %2403  ;;  %v1425_v15 = vmul.f32 1.442695, %v1422_v13 }
 0x2d1   : >> { %v1427_v16 = vsel %vm1414_vm2, %v2404_v14, 0.0 }
 0x2d2   : >> { %2405 = vpow2.f32 %v1425_v15  ;;  %1428 = vadd.xlane.f32.xlu1 %v1427_v16 }
 0x2d8   : >> { %v2406_v17 = vpop.eup %2405 }
 0x2d9   : >> { %v1430_v18 = vsel %vm1414_vm2, %v2406_v17, 0.0  ;;  %v1433_v19 = vpack.c.bf16 %v2406_v17, %v2404_v14 }
 0x2da   : >> { %1431 = vadd.xlane.f32.xlu1 %v1430_v18 }
 0x2db   : >> { %2154 = vmatmul.msk.bf16.vlgmr.msra.gmra.mxu1 %vm1414_vm2, %v1433_v19 }
 0x345   : >> { %v1429_v34 = vpop.xlane.xlu1 %1428 }
 0x346   : >> { %2407 = vrcp.f32 %v1429_v34 }
 0x34c   : >> { %v2408_v37 = vpop.eup %2407 }
 0x34d   : >> { %v1432_v35 = vpop.xlane.xlu1 %1431 }
 0x34e   : >> { %2409 = vrcp.f32 %v1432_v35 }
 0x354   : >> { %v2410_v38 = vpop.eup %2409 }
 0x358   : >> { %v1452_v36 = vpop.f32.mrf.mxu1 }
 0x359   : >> { %v1459_v40 = vmul.f32 %v2408_v37, %v1452_v36 }
 0x360   : >> { %v1454_v39 = vpop.f32.mrf.mxu1 }
 0x361   : >> { %v1460_v41 = vmul.f32 %v2410_v38, %v1454_v39 }
 0x363   : >> { %v1475_v42 = vpack.c.bf16 %v1460_v41, %v1459_v40 }
 0x365   : >> { %2174 = vmatmul.msk.bf16.vlgmr.msra.gmra.mxu2 %vm1393_vm1, %v1475_v42  ;;  %2175 = vmatmul.msk.bf16.vlgmr.msra.gmra.mxu3 %vm1393_vm1, %v1475_v42 }
 0x3e8   : >> { %v1508_v45 = vpop.f32.mrf.mxu2  ;;  %v1522_v46 = vpop.f32.mrf.mxu3 }
 0x3e9   : >> { %v1527_v47 = vadd.f32 %v1508_v45, %v1471_v43  ;;  %v1528_v48 = vadd.f32 %v1522_v46, %v1472_v44 }
 0x3eb   : >> { %1531 = vst [vmem:[#allocation5 + $0x10] sm:$0xff] %v1527_v47 }
 0x3ec   : >> { %1532 = vst [vmem:[#allocation5] sm:$0xff] %v1528_v48 }
 0x3f0   : >> { %v1510_v51 = vpop.f32.mrf.mxu2  ;;  %v1524_v52 = vpop.f32.mrf.mxu3 }
 0x3f1   : >> { %v1529_v53 = vadd.f32 %v1510_v51, %v1473_v49  ;;  %v1530_v54 = vadd.f32 %v1524_v52, %v1474_v50  ;;  %1368 = sbr.rel (!%p1366_p1) target bundleno = 456 (0x1c8), region = 154 }
 0x3f2   : > { %v1535_v55 = vld [vmem:[#allocation5 + $0x10] sm:$0xff] (%p1366_p1) }
 0x3f3   : >> { %1533 = vst [vmem:[#allocation5 + $0x18] sm:$0xff] %v1529_v53  ;;  %v1536_v26 = vld [vmem:[#allocation5] sm:$0xff] (%p1366_p1)  ;;  %v1545_v60 = vadd.f32 (%p1366_p1), %v1541_v30, %v1535_v55 }
 0x3f4   : >> { %1534 = vst [vmem:[#allocation5 + $0x8] sm:$0xff] %v1530_v54  ;;  %v1546_v61 = vadd.f32 (%p1366_p1), %v1542_v57, %v1536_v26 }
 0x3f5   : > { %1549 = vst [vmem:[%s3006_s11] sm:$0xff] (%p1366_p1), %v1545_v60 }
 0x3f6   : > { %1550 = vst [vmem:[%s3006_s11 + $0x8] sm:$0xff] %v1546_v61 }
 0x3fa   : > { %v1537_v58 = vld [vmem:[#allocation5 + $0x18] sm:$0xff] }
 0x3fb   : > { %v1538_v59 = vld [vmem:[#allocation5 + $0x8] sm:$0xff]  ;;  %v1547_v62 = vadd.f32 %v1541_v30, %v1537_v58 }
 0x3fc   : > { %v1548_v63 = vadd.f32 %v1542_v57, %v1538_v59 }
 0x3fd   : > { %1551 = vst [vmem:[%s3006_s11 + $0x10] sm:$0xff] %v1547_v62 }
 0x3fe   : > { %1552 = vst [vmem:[%s3006_s11 + $0x18] sm:$0xff] %v1548_v63 }
 0x3ff   : > { %2618 = shalt.err (!%p2615_p11)
}
 0x400   : > { %s2693_s10 = smov 256   ;;  %s2694_s11 = smov 16  }
 0x401   : > { %2315 = dma.vmem_to_hbm [thread:$0]  (%p2830_p0), %s1567_s19, 512, %s1569_s30, %s1554_s28, %s2693_s10, %s2693_s10, %s2694_s11  }
 0x402 PF: > { %p2350_p12 = scmp.ge.s32.totalorder %s2677_s27, 2  ;;  %s1583_s13 = sand.u32 1, %s2665_s24  }
 0x403   : > { %s1584_s17 = scalar_lea.sflag [#allocation8], %s1583_s13 }
 0x404   : > { %p2338_p13 = pnand %p2350_p12, %p2770_p6 }
 0x406   : > { %p2339_p3 = pneg %p2338_p13 }
 0x408   : > { %2660 = dma.done.wait (%p2339_p3), %s1584_s17, 512  }
 0x409   : > { %2662 = vsyncadd (%p2339_p3), %s1584_s17, 4294966784  ;;  %s3098_s22 = sld [smem:[#allocation24_spill]]  ;;  %p25_p5 = scmp.ge.s32.totalorder %s2820_s21, 6  }
 0x40a   : > { %s3099_s24 = smov %s2669_s25  ;;  %s3100_s25 = smov %s2673_s26 }
 0x40b   : > { %s3102_s27 = smov %s2820_s21  ;;  %27 = sbr.rel (!%p25_p5) target bundleno = 15 (0xf), region = 165 }
 0x40f   : > { %s3101_s26 = smov %s3098_s22 }
 0x410   :  { %1590 = vsyncpa [#allocation7], 1 }
 0x411   :  { %1592 = vsyncpa [#allocation7 + $0x1], 1 }
 0x412   :  { %1593 = vsyncpa [#allocation10], 1 }
 0x413   :  { %1595 = vsyncpa [#allocation10 + $0x1], 1 }
 0x414   :  { %1596 = vsyncpa [#allocation13], 1 }
 0x415   :  { %1597 = vsyncpa [#allocation16], 1 }
 0x416   :  { %1598 = vsyncpa [#allocation8], 1 }
 0x417   :  { %1600 = vsyncpa [#allocation8 + $0x1], 1 }

</bundles_post_ra>
